<compile_context>
chip_gen: v6e
topology: v6e:2x2x1
jax: 0.10.0
libtpu: 0.0.40
codegen_flags: <defaults>
</compile_context>

<pallas_src>
import functools

import jax
import jax.numpy as jnp
from jax import lax
from jax.experimental import pallas as pl
from jax.experimental.pallas import tpu as pltpu

C1, C2, C3 = 8, 16, 8     # conv1 / conv2 / conv3 output channels
KH, KW = 3, 3             # conv1 kernel size


def _fused_conv_kernel(x_ref, w_ref, b_ref, y_ref, *, H, L):
    """One lane-packed image group per grid step.

    x_ref : (1, H, L)        VMEM  (L = Nb*W: Nb images side by side in lanes)
    w_ref : (C3, KH*KW)      SMEM  fused weights (conv3 o conv1, incl. the x2)
    b_ref : (C3,)            SMEM  fused bias
    y_ref : (1, C3, Ho, Lc)  VMEM  (Lc = L - KW + 1; near lane-dense)
    """
    Ho = H - KH + 1
    Lc = L - KW + 1
    x = x_ref[0]  # (H, L)

    # Hoist the 9 shifted taps out of the channel loop; each is reused by all
    # C3 output channels (tap-outer / channel-inner).
    taps = [x[kh:kh + Ho, kw:kw + Lc] for kh in range(KH) for kw in range(KW)]

    for co in range(C3):
        acc = jnp.full((Ho, Lc), b_ref[co], jnp.float32)   # bias folded into init
        for t in range(KH * KW):
            acc = acc + w_ref[co, t] * taps[t]
        y_ref[0, co] = acc


def model_forward(x, params):
    """x: (N, 1, H, W) float32, NCHW.  Returns v4: (N, C3, H-2, W-2)."""
    N, Cin, H, W = x.shape
    assert Cin == 1
    Ho, Wo = H - KH + 1, W - KW + 1

    # ---- Fuse conv3 o (2 * conv1) into a single 3x3, 1->C3 conv (conv2 dead).
    w1 = params["w1"][:, 0]                         # (C1, KH, KW)
    b1 = params["b1"]                               # (C1,)
    w3 = params["w3"].reshape(C3, C1)               # (C3, C1)
    b3 = params["b3"]                               # (C3,)
    w_eff = jnp.einsum("oc,chw->ohw", 2.0 * w3, w1)  # (C3, KH, KW)
    b_eff = 2.0 * (w3 @ b1) + b3                     # (C3,)
    # conv2 (w2/b2) intentionally unused: its result is dead in the forward.

    # ---- Pack Nb images side by side along the lane axis (lane-dense).
    nb = min(N, max(1, 128 // W))
    G = -(-N // nb)
    Np = G * nb
    xp = x.reshape(N, H, W)
    if Np != N:
        xp = jnp.concatenate([xp, jnp.zeros((Np - N, H, W), xp.dtype)], axis=0)
    L = nb * W
    Lc = L - KW + 1
    xp = xp.reshape(G, nb, H, W).transpose(0, 2, 1, 3).reshape(G, H, L)

    smem_spec = pl.BlockSpec(memory_space=pltpu.MemorySpace.SMEM)
    kernel = functools.partial(_fused_conv_kernel, H=H, L=L)

    y = pl.pallas_call(
        kernel,
        out_shape=jax.ShapeDtypeStruct((G, C3, Ho, Lc), jnp.float32),
        grid=(G,),
        in_specs=[
            pl.BlockSpec((1, H, L), lambda g: (g, 0, 0)),   # packed images
            smem_spec,                                       # fused weights
            smem_spec,                                       # fused bias
        ],
        out_specs=pl.BlockSpec((1, C3, Ho, Lc), lambda g: (g, 0, 0, 0)),
        compiler_params=pltpu.CompilerParams(dimension_semantics=("parallel",)),
    )(xp, w_eff.reshape(C3, KH * KW), b_eff)

    # ---- Un-pack: image b of a group owns lanes [b*W, b*W + Wo) of the output.
    y = jnp.stack([y[:, :, :, b * W:b * W + Wo] for b in range(nb)], axis=1)
    y = y.reshape(Np, C3, Ho, Wo)[:N]
    return y


def reference_forward(x, params):
    """Pure-JAX NCHW reference (mirrors the torch forward, incl. dead conv2)."""
    dn = ("NCHW", "OIHW", "NCHW")
    v1 = lax.conv_general_dilated(x, params["w1"], (1, 1), "VALID",
                                  dimension_numbers=dn) + params["b1"][None, :, None, None]
    v2 = v1 + v1
    _v3 = lax.conv_general_dilated(v1, params["w2"], (1, 1), "VALID",
                                   dimension_numbers=dn) + params["b2"][None, :, None, None]
    v4 = lax.conv_general_dilated(v2, params["w3"], (1, 1), "VALID",
                                  dimension_numbers=dn) + params["b3"][None, :, None, None]
    return v4


def init_params(key):
    ks = jax.random.split(key, 6)
    return {
        "w1": jax.random.normal(ks[0], (C1, 1, KH, KW), jnp.float32) * 0.2,
        "b1": jax.random.normal(ks[1], (C1,), jnp.float32) * 0.1,
        "w2": jax.random.normal(ks[2], (C2, C1, 1, 1), jnp.float32) * 0.2,
        "b2": jax.random.normal(ks[3], (C2,), jnp.float32) * 0.1,
        "w3": jax.random.normal(ks[4], (C3, C1, 1, 1), jnp.float32) * 0.2,
        "b3": jax.random.normal(ks[5], (C3,), jnp.float32) * 0.1,
    }


if __name__ == "__main__":
    key = jax.random.PRNGKey(0)
    k_x, k_p = jax.random.split(key)

    N, H, W = 8, 32, 32          # 4 images packed per grid step -> 2 parallel steps
    x = jax.random.normal(k_x, (N, 1, H, W), jnp.float32)
    params = init_params(k_p)

    v4 = jax.block_until_ready(model_forward(x, params))
    v4_ref = jax.block_until_ready(reference_forward(x, params))

    assert v4.shape == (N, C3, H - 2, W - 2), v4.shape
    assert jnp.allclose(v4, v4_ref, atol=1e-4, rtol=1e-4), float(
        jnp.max(jnp.abs(v4 - v4_ref)))

    print("KERNEL_OK")
</pallas_src>

<mosaic_0001>
module attributes {stable_mosaic.version = 11 : i64} {
  func.func @_fused_conv_kernel(%arg0: i32, %arg1: memref<1x32x128xf32, #tpu.memory_space<vmem>>, %arg2: memref<8x9xf32, #tpu.memory_space<smem>>, %arg3: memref<8xf32, #tpu.memory_space<smem>>, %arg4: memref<1x8x30x126xf32, #tpu.memory_space<vmem>>) attributes {dimension_semantics = [#tpu.dimension_semantics<parallel>], iteration_bounds = array<i64: 2>, scalar_prefetch = 0 : i64, scratch_operands = 0 : i64, tpu.core_type = #tpu.core_type<tc>, window_params = [{transform_indices = @transform_0, window_bounds = array<i64: 1, 32, 128>}, {transform_indices = @transform_1, window_bounds = array<i64: 8, 9>}, {transform_indices = @transform_2, window_bounds = array<i64: 8>}, {transform_indices = @transform_3, window_bounds = array<i64: 1, 8, 30, 126>}]} {
    %c0 = arith.constant 0 : index
    %c0_0 = arith.constant 0 : index
    %c0_1 = arith.constant 0 : index
    %0 = vector.load %arg1[%c0, %c0_0, %c0_1] : memref<1x32x128xf32, #tpu.memory_space<vmem>>, vector<1x32x128xf32>
    %1 = vector.shape_cast %0 : vector<1x32x128xf32> to vector<32x128xf32>
    %2 = vector.extract_strided_slice %1 {offsets = [0, 0], sizes = [30, 126], strides = [1, 1]} : vector<32x128xf32> to vector<30x126xf32>
    %3 = vector.extract_strided_slice %1 {offsets = [0, 1], sizes = [30, 126], strides = [1, 1]} : vector<32x128xf32> to vector<30x126xf32>
    %4 = vector.extract_strided_slice %1 {offsets = [0, 2], sizes = [30, 126], strides = [1, 1]} : vector<32x128xf32> to vector<30x126xf32>
    %5 = vector.extract_strided_slice %1 {offsets = [1, 0], sizes = [30, 126], strides = [1, 1]} : vector<32x128xf32> to vector<30x126xf32>
    %6 = vector.extract_strided_slice %1 {offsets = [1, 1], sizes = [30, 126], strides = [1, 1]} : vector<32x128xf32> to vector<30x126xf32>
    %7 = vector.extract_strided_slice %1 {offsets = [1, 2], sizes = [30, 126], strides = [1, 1]} : vector<32x128xf32> to vector<30x126xf32>
    %8 = vector.extract_strided_slice %1 {offsets = [2, 0], sizes = [30, 126], strides = [1, 1]} : vector<32x128xf32> to vector<30x126xf32>
    %9 = vector.extract_strided_slice %1 {offsets = [2, 1], sizes = [30, 126], strides = [1, 1]} : vector<32x128xf32> to vector<30x126xf32>
    %10 = vector.extract_strided_slice %1 {offsets = [2, 2], sizes = [30, 126], strides = [1, 1]} : vector<32x128xf32> to vector<30x126xf32>
    %c0_2 = arith.constant 0 : index
    %11 = memref.load %arg3[%c0_2] : memref<8xf32, #tpu.memory_space<smem>>
    %12 = vector.broadcast %11 : f32 to vector<30x126xf32>
    %c0_3 = arith.constant 0 : index
    %c0_4 = arith.constant 0 : index
    %13 = memref.load %arg2[%c0_3, %c0_4] : memref<8x9xf32, #tpu.memory_space<smem>>
    %14 = vector.broadcast %13 : f32 to vector<30x126xf32>
    %15 = arith.mulf %14, %2 : vector<30x126xf32>
    %16 = arith.addf %12, %15 : vector<30x126xf32>
    %c0_5 = arith.constant 0 : index
    %c1 = arith.constant 1 : index
    %17 = memref.load %arg2[%c0_5, %c1] : memref<8x9xf32, #tpu.memory_space<smem>>
    %18 = vector.broadcast %17 : f32 to vector<30x126xf32>
    %19 = arith.mulf %18, %3 : vector<30x126xf32>
    %20 = arith.addf %16, %19 : vector<30x126xf32>
    %c0_6 = arith.constant 0 : index
    %c2 = arith.constant 2 : index
    %21 = memref.load %arg2[%c0_6, %c2] : memref<8x9xf32, #tpu.memory_space<smem>>
    %22 = vector.broadcast %21 : f32 to vector<30x126xf32>
    %23 = arith.mulf %22, %4 : vector<30x126xf32>
    %24 = arith.addf %20, %23 : vector<30x126xf32>
    %c0_7 = arith.constant 0 : index
    %c3 = arith.constant 3 : index
    %25 = memref.load %arg2[%c0_7, %c3] : memref<8x9xf32, #tpu.memory_space<smem>>
    %26 = vector.broadcast %25 : f32 to vector<30x126xf32>
    %27 = arith.mulf %26, %5 : vector<30x126xf32>
    %28 = arith.addf %24, %27 : vector<30x126xf32>
    %c0_8 = arith.constant 0 : index
    %c4 = arith.constant 4 : index
    %29 = memref.load %arg2[%c0_8, %c4] : memref<8x9xf32, #tpu.memory_space<smem>>
    %30 = vector.broadcast %29 : f32 to vector<30x126xf32>
    %31 = arith.mulf %30, %6 : vector<30x126xf32>
    %32 = arith.addf %28, %31 : vector<30x126xf32>
    %c0_9 = arith.constant 0 : index
    %c5 = arith.constant 5 : index
    %33 = memref.load %arg2[%c0_9, %c5] : memref<8x9xf32, #tpu.memory_space<smem>>
    %34 = vector.broadcast %33 : f32 to vector<30x126xf32>
    %35 = arith.mulf %34, %7 : vector<30x126xf32>
    %36 = arith.addf %32, %35 : vector<30x126xf32>
    %c0_10 = arith.constant 0 : index
    %c6 = arith.constant 6 : index
    %37 = memref.load %arg2[%c0_10, %c6] : memref<8x9xf32, #tpu.memory_space<smem>>
    %38 = vector.broadcast %37 : f32 to vector<30x126xf32>
    %39 = arith.mulf %38, %8 : vector<30x126xf32>
    %40 = arith.addf %36, %39 : vector<30x126xf32>
    %c0_11 = arith.constant 0 : index
    %c7 = arith.constant 7 : index
    %41 = memref.load %arg2[%c0_11, %c7] : memref<8x9xf32, #tpu.memory_space<smem>>
    %42 = vector.broadcast %41 : f32 to vector<30x126xf32>
    %43 = arith.mulf %42, %9 : vector<30x126xf32>
    %44 = arith.addf %40, %43 : vector<30x126xf32>
    %c0_12 = arith.constant 0 : index
    %c8 = arith.constant 8 : index
    %45 = memref.load %arg2[%c0_12, %c8] : memref<8x9xf32, #tpu.memory_space<smem>>
    %46 = vector.broadcast %45 : f32 to vector<30x126xf32>
    %47 = arith.mulf %46, %10 : vector<30x126xf32>
    %48 = arith.addf %44, %47 : vector<30x126xf32>
    %c0_13 = arith.constant 0 : index
    %c0_14 = arith.constant 0 : index
    %c0_15 = arith.constant 0 : index
    %c0_16 = arith.constant 0 : index
    %49 = vector.load %arg4[%c0_13, %c0_14, %c0_15, %c0_16] : memref<1x8x30x126xf32, #tpu.memory_space<vmem>>, vector<1x1x30x126xf32>
    %50 = vector.shape_cast %49 : vector<1x1x30x126xf32> to vector<30x126xf32>
    %51 = vector.shape_cast %48 : vector<30x126xf32> to vector<1x1x30x126xf32>
    tpu.vector_store %arg4[%c0_13, %c0_14, %c0_15, %c0_16], %51 {strides = array<i32>} : memref<1x8x30x126xf32, #tpu.memory_space<vmem>>, vector<1x1x30x126xf32>,
    %c1_17 = arith.constant 1 : index
    %52 = memref.load %arg3[%c1_17] : memref<8xf32, #tpu.memory_space<smem>>
    %53 = vector.broadcast %52 : f32 to vector<30x126xf32>
    %c1_18 = arith.constant 1 : index
    %c0_19 = arith.constant 0 : index
    %54 = memref.load %arg2[%c1_18, %c0_19] : memref<8x9xf32, #tpu.memory_space<smem>>
    %55 = vector.broadcast %54 : f32 to vector<30x126xf32>
    %56 = arith.mulf %55, %2 : vector<30x126xf32>
    %57 = arith.addf %53, %56 : vector<30x126xf32>
    %c1_20 = arith.constant 1 : index
    %c1_21 = arith.constant 1 : index
    %58 = memref.load %arg2[%c1_20, %c1_21] : memref<8x9xf32, #tpu.memory_space<smem>>
    %59 = vector.broadcast %58 : f32 to vector<30x126xf32>
    %60 = arith.mulf %59, %3 : vector<30x126xf32>
    %61 = arith.addf %57, %60 : vector<30x126xf32>
    %c1_22 = arith.constant 1 : index
    %c2_23 = arith.constant 2 : index
    %62 = memref.load %arg2[%c1_22, %c2_23] : memref<8x9xf32, #tpu.memory_space<smem>>
    %63 = vector.broadcast %62 : f32 to vector<30x126xf32>
    %64 = arith.mulf %63, %4 : vector<30x126xf32>
    %65 = arith.addf %61, %64 : vector<30x126xf32>
    %c1_24 = arith.constant 1 : index
    %c3_25 = arith.constant 3 : index
    %66 = memref.load %arg2[%c1_24, %c3_25] : memref<8x9xf32, #tpu.memory_space<smem>>
    %67 = vector.broadcast %66 : f32 to vector<30x126xf32>
    %68 = arith.mulf %67, %5 : vector<30x126xf32>
    %69 = arith.addf %65, %68 : vector<30x126xf32>
    %c1_26 = arith.constant 1 : index
    %c4_27 = arith.constant 4 : index
    %70 = memref.load %arg2[%c1_26, %c4_27] : memref<8x9xf32, #tpu.memory_space<smem>>
    %71 = vector.broadcast %70 : f32 to vector<30x126xf32>
    %72 = arith.mulf %71, %6 : vector<30x126xf32>
    %73 = arith.addf %69, %72 : vector<30x126xf32>
    %c1_28 = arith.constant 1 : index
    %c5_29 = arith.constant 5 : index
    %74 = memref.load %arg2[%c1_28, %c5_29] : memref<8x9xf32, #tpu.memory_space<smem>>
    %75 = vector.broadcast %74 : f32 to vector<30x126xf32>
    %76 = arith.mulf %75, %7 : vector<30x126xf32>
    %77 = arith.addf %73, %76 : vector<30x126xf32>
    %c1_30 = arith.constant 1 : index
    %c6_31 = arith.constant 6 : index
    %78 = memref.load %arg2[%c1_30, %c6_31] : memref<8x9xf32, #tpu.memory_space<smem>>
    %79 = vector.broadcast %78 : f32 to vector<30x126xf32>
    %80 = arith.mulf %79, %8 : vector<30x126xf32>
    %81 = arith.addf %77, %80 : vector<30x126xf32>
    %c1_32 = arith.constant 1 : index
    %c7_33 = arith.constant 7 : index
    %82 = memref.load %arg2[%c1_32, %c7_33] : memref<8x9xf32, #tpu.memory_space<smem>>
    %83 = vector.broadcast %82 : f32 to vector<30x126xf32>
    %84 = arith.mulf %83, %9 : vector<30x126xf32>
    %85 = arith.addf %81, %84 : vector<30x126xf32>
    %c1_34 = arith.constant 1 : index
    %c8_35 = arith.constant 8 : index
    %86 = memref.load %arg2[%c1_34, %c8_35] : memref<8x9xf32, #tpu.memory_space<smem>>
    %87 = vector.broadcast %86 : f32 to vector<30x126xf32>
    %88 = arith.mulf %87, %10 : vector<30x126xf32>
    %89 = arith.addf %85, %88 : vector<30x126xf32>
    %c0_36 = arith.constant 0 : index
    %c1_37 = arith.constant 1 : index
    %c0_38 = arith.constant 0 : index
    %c0_39 = arith.constant 0 : index
    %90 = vector.load %arg4[%c0_36, %c1_37, %c0_38, %c0_39] : memref<1x8x30x126xf32, #tpu.memory_space<vmem>>, vector<1x1x30x126xf32>
    %91 = vector.shape_cast %90 : vector<1x1x30x126xf32> to vector<30x126xf32>
    %92 = vector.shape_cast %89 : vector<30x126xf32> to vector<1x1x30x126xf32>
    tpu.vector_store %arg4[%c0_36, %c1_37, %c0_38, %c0_39], %92 {strides = array<i32>} : memref<1x8x30x126xf32, #tpu.memory_space<vmem>>, vector<1x1x30x126xf32>,
    %c2_40 = arith.constant 2 : index
    %93 = memref.load %arg3[%c2_40] : memref<8xf32, #tpu.memory_space<smem>>
    %94 = vector.broadcast %93 : f32 to vector<30x126xf32>
    %c2_41 = arith.constant 2 : index
    %c0_42 = arith.constant 0 : index
    %95 = memref.load %arg2[%c2_41, %c0_42] : memref<8x9xf32, #tpu.memory_space<smem>>
    %96 = vector.broadcast %95 : f32 to vector<30x126xf32>
    %97 = arith.mulf %96, %2 : vector<30x126xf32>
    %98 = arith.addf %94, %97 : vector<30x126xf32>
    %c2_43 = arith.constant 2 : index
    %c1_44 = arith.constant 1 : index
    %99 = memref.load %arg2[%c2_43, %c1_44] : memref<8x9xf32, #tpu.memory_space<smem>>
    %100 = vector.broadcast %99 : f32 to vector<30x126xf32>
    %101 = arith.mulf %100, %3 : vector<30x126xf32>
    %102 = arith.addf %98, %101 : vector<30x126xf32>
    %c2_45 = arith.constant 2 : index
    %c2_46 = arith.constant 2 : index
    %103 = memref.load %arg2[%c2_45, %c2_46] : memref<8x9xf32, #tpu.memory_space<smem>>
    %104 = vector.broadcast %103 : f32 to vector<30x126xf32>
    %105 = arith.mulf %104, %4 : vector<30x126xf32>
    %106 = arith.addf %102, %105 : vector<30x126xf32>
    %c2_47 = arith.constant 2 : index
    %c3_48 = arith.constant 3 : index
    %107 = memref.load %arg2[%c2_47, %c3_48] : memref<8x9xf32, #tpu.memory_space<smem>>
    %108 = vector.broadcast %107 : f32 to vector<30x126xf32>
    %109 = arith.mulf %108, %5 : vector<30x126xf32>
    %110 = arith.addf %106, %109 : vector<30x126xf32>
    %c2_49 = arith.constant 2 : index
    %c4_50 = arith.constant 4 : index
    %111 = memref.load %arg2[%c2_49, %c4_50] : memref<8x9xf32, #tpu.memory_space<smem>>
    %112 = vector.broadcast %111 : f32 to vector<30x126xf32>
    %113 = arith.mulf %112, %6 : vector<30x126xf32>
    %114 = arith.addf %110, %113 : vector<30x126xf32>
    %c2_51 = arith.constant 2 : index
    %c5_52 = arith.constant 5 : index
    %115 = memref.load %arg2[%c2_51, %c5_52] : memref<8x9xf32, #tpu.memory_space<smem>>
    %116 = vector.broadcast %115 : f32 to vector<30x126xf32>
    %117 = arith.mulf %116, %7 : vector<30x126xf32>
    %118 = arith.addf %114, %117 : vector<30x126xf32>
    %c2_53 = arith.constant 2 : index
    %c6_54 = arith.constant 6 : index
    %119 = memref.load %arg2[%c2_53, %c6_54] : memref<8x9xf32, #tpu.memory_space<smem>>
    %120 = vector.broadcast %119 : f32 to vector<30x126xf32>
    %121 = arith.mulf %120, %8 : vector<30x126xf32>
    %122 = arith.addf %118, %121 : vector<30x126xf32>
    %c2_55 = arith.constant 2 : index
    %c7_56 = arith.constant 7 : index
    %123 = memref.load %arg2[%c2_55, %c7_56] : memref<8x9xf32, #tpu.memory_space<smem>>
    %124 = vector.broadcast %123 : f32 to vector<30x126xf32>
    %125 = arith.mulf %124, %9 : vector<30x126xf32>
    %126 = arith.addf %122, %125 : vector<30x126xf32>
    %c2_57 = arith.constant 2 : index
    %c8_58 = arith.constant 8 : index
    %127 = memref.load %arg2[%c2_57, %c8_58] : memref<8x9xf32, #tpu.memory_space<smem>>
    %128 = vector.broadcast %127 : f32 to vector<30x126xf32>
    %129 = arith.mulf %128, %10 : vector<30x126xf32>
    %130 = arith.addf %126, %129 : vector<30x126xf32>
    %c0_59 = arith.constant 0 : index
    %c2_60 = arith.constant 2 : index
    %c0_61 = arith.constant 0 : index
    %c0_62 = arith.constant 0 : index
    %131 = vector.load %arg4[%c0_59, %c2_60, %c0_61, %c0_62] : memref<1x8x30x126xf32, #tpu.memory_space<vmem>>, vector<1x1x30x126xf32>
    %132 = vector.shape_cast %131 : vector<1x1x30x126xf32> to vector<30x126xf32>
    %133 = vector.shape_cast %130 : vector<30x126xf32> to vector<1x1x30x126xf32>
    tpu.vector_store %arg4[%c0_59, %c2_60, %c0_61, %c0_62], %133 {strides = array<i32>} : memref<1x8x30x126xf32, #tpu.memory_space<vmem>>, vector<1x1x30x126xf32>,
    %c3_63 = arith.constant 3 : index
    %134 = memref.load %arg3[%c3_63] : memref<8xf32, #tpu.memory_space<smem>>
    %135 = vector.broadcast %134 : f32 to vector<30x126xf32>
    %c3_64 = arith.constant 3 : index
    %c0_65 = arith.constant 0 : index
    %136 = memref.load %arg2[%c3_64, %c0_65] : memref<8x9xf32, #tpu.memory_space<smem>>
    %137 = vector.broadcast %136 : f32 to vector<30x126xf32>
    %138 = arith.mulf %137, %2 : vector<30x126xf32>
    %139 = arith.addf %135, %138 : vector<30x126xf32>
    %c3_66 = arith.constant 3 : index
    %c1_67 = arith.constant 1 : index
    %140 = memref.load %arg2[%c3_66, %c1_67] : memref<8x9xf32, #tpu.memory_space<smem>>
    %141 = vector.broadcast %140 : f32 to vector<30x126xf32>
    %142 = arith.mulf %141, %3 : vector<30x126xf32>
    %143 = arith.addf %139, %142 : vector<30x126xf32>
    %c3_68 = arith.constant 3 : index
    %c2_69 = arith.constant 2 : index
    %144 = memref.load %arg2[%c3_68, %c2_69] : memref<8x9xf32, #tpu.memory_space<smem>>
    %145 = vector.broadcast %144 : f32 to vector<30x126xf32>
    %146 = arith.mulf %145, %4 : vector<30x126xf32>
    %147 = arith.addf %143, %146 : vector<30x126xf32>
    %c3_70 = arith.constant 3 : index
    %c3_71 = arith.constant 3 : index
    %148 = memref.load %arg2[%c3_70, %c3_71] : memref<8x9xf32, #tpu.memory_space<smem>>
    %149 = vector.broadcast %148 : f32 to vector<30x126xf32>
    %150 = arith.mulf %149, %5 : vector<30x126xf32>
    %151 = arith.addf %147, %150 : vector<30x126xf32>
    %c3_72 = arith.constant 3 : index
    %c4_73 = arith.constant 4 : index
    %152 = memref.load %arg2[%c3_72, %c4_73] : memref<8x9xf32, #tpu.memory_space<smem>>
    %153 = vector.broadcast %152 : f32 to vector<30x126xf32>
    %154 = arith.mulf %153, %6 : vector<30x126xf32>
    %155 = arith.addf %151, %154 : vector<30x126xf32>
    %c3_74 = arith.constant 3 : index
    %c5_75 = arith.constant 5 : index
    %156 = memref.load %arg2[%c3_74, %c5_75] : memref<8x9xf32, #tpu.memory_space<smem>>
    %157 = vector.broadcast %156 : f32 to vector<30x126xf32>
    %158 = arith.mulf %157, %7 : vector<30x126xf32>
    %159 = arith.addf %155, %158 : vector<30x126xf32>
    %c3_76 = arith.constant 3 : index
    %c6_77 = arith.constant 6 : index
    %160 = memref.load %arg2[%c3_76, %c6_77] : memref<8x9xf32, #tpu.memory_space<smem>>
    %161 = vector.broadcast %160 : f32 to vector<30x126xf32>
    %162 = arith.mulf %161, %8 : vector<30x126xf32>
    %163 = arith.addf %159, %162 : vector<30x126xf32>
    %c3_78 = arith.constant 3 : index
    %c7_79 = arith.constant 7 : index
    %164 = memref.load %arg2[%c3_78, %c7_79] : memref<8x9xf32, #tpu.memory_space<smem>>
    %165 = vector.broadcast %164 : f32 to vector<30x126xf32>
    %166 = arith.mulf %165, %9 : vector<30x126xf32>
    %167 = arith.addf %163, %166 : vector<30x126xf32>
    %c3_80 = arith.constant 3 : index
    %c8_81 = arith.constant 8 : index
    %168 = memref.load %arg2[%c3_80, %c8_81] : memref<8x9xf32, #tpu.memory_space<smem>>
    %169 = vector.broadcast %168 : f32 to vector<30x126xf32>
    %170 = arith.mulf %169, %10 : vector<30x126xf32>
    %171 = arith.addf %167, %170 : vector<30x126xf32>
    %c0_82 = arith.constant 0 : index
    %c3_83 = arith.constant 3 : index
    %c0_84 = arith.constant 0 : index
    %c0_85 = arith.constant 0 : index
    %172 = vector.load %arg4[%c0_82, %c3_83, %c0_84, %c0_85] : memref<1x8x30x126xf32, #tpu.memory_space<vmem>>, vector<1x1x30x126xf32>
    %173 = vector.shape_cast %172 : vector<1x1x30x126xf32> to vector<30x126xf32>
    %174 = vector.shape_cast %171 : vector<30x126xf32> to vector<1x1x30x126xf32>
    tpu.vector_store %arg4[%c0_82, %c3_83, %c0_84, %c0_85], %174 {strides = array<i32>} : memref<1x8x30x126xf32, #tpu.memory_space<vmem>>, vector<1x1x30x126xf32>,
    %c4_86 = arith.constant 4 : index
    %175 = memref.load %arg3[%c4_86] : memref<8xf32, #tpu.memory_space<smem>>
    %176 = vector.broadcast %175 : f32 to vector<30x126xf32>
    %c4_87 = arith.constant 4 : index
    %c0_88 = arith.constant 0 : index
    %177 = memref.load %arg2[%c4_87, %c0_88] : memref<8x9xf32, #tpu.memory_space<smem>>
    %178 = vector.broadcast %177 : f32 to vector<30x126xf32>
    %179 = arith.mulf %178, %2 : vector<30x126xf32>
    %180 = arith.addf %176, %179 : vector<30x126xf32>
    %c4_89 = arith.constant 4 : index
    %c1_90 = arith.constant 1 : index
    %181 = memref.load %arg2[%c4_89, %c1_90] : memref<8x9xf32, #tpu.memory_space<smem>>
    %182 = vector.broadcast %181 : f32 to vector<30x126xf32>
    %183 = arith.mulf %182, %3 : vector<30x126xf32>
    %184 = arith.addf %180, %183 : vector<30x126xf32>
    %c4_91 = arith.constant 4 : index
    %c2_92 = arith.constant 2 : index
    %185 = memref.load %arg2[%c4_91, %c2_92] : memref<8x9xf32, #tpu.memory_space<smem>>
    %186 = vector.broadcast %185 : f32 to vector<30x126xf32>
    %187 = arith.mulf %186, %4 : vector<30x126xf32>
    %188 = arith.addf %184, %187 : vector<30x126xf32>
    %c4_93 = arith.constant 4 : index
    %c3_94 = arith.constant 3 : index
    %189 = memref.load %arg2[%c4_93, %c3_94] : memref<8x9xf32, #tpu.memory_space<smem>>
    %190 = vector.broadcast %189 : f32 to vector<30x126xf32>
    %191 = arith.mulf %190, %5 : vector<30x126xf32>
    %192 = arith.addf %188, %191 : vector<30x126xf32>
    %c4_95 = arith.constant 4 : index
    %c4_96 = arith.constant 4 : index
    %193 = memref.load %arg2[%c4_95, %c4_96] : memref<8x9xf32, #tpu.memory_space<smem>>
    %194 = vector.broadcast %193 : f32 to vector<30x126xf32>
    %195 = arith.mulf %194, %6 : vector<30x126xf32>
    %196 = arith.addf %192, %195 : vector<30x126xf32>
    %c4_97 = arith.constant 4 : index
    %c5_98 = arith.constant 5 : index
    %197 = memref.load %arg2[%c4_97, %c5_98] : memref<8x9xf32, #tpu.memory_space<smem>>
    %198 = vector.broadcast %197 : f32 to vector<30x126xf32>
    %199 = arith.mulf %198, %7 : vector<30x126xf32>
    %200 = arith.addf %196, %199 : vector<30x126xf32>
    %c4_99 = arith.constant 4 : index
    %c6_100 = arith.constant 6 : index
    %201 = memref.load %arg2[%c4_99, %c6_100] : memref<8x9xf32, #tpu.memory_space<smem>>
    %202 = vector.broadcast %201 : f32 to vector<30x126xf32>
    %203 = arith.mulf %202, %8 : vector<30x126xf32>
    %204 = arith.addf %200, %203 : vector<30x126xf32>
    %c4_101 = arith.constant 4 : index
    %c7_102 = arith.constant 7 : index
    %205 = memref.load %arg2[%c4_101, %c7_102] : memref<8x9xf32, #tpu.memory_space<smem>>
    %206 = vector.broadcast %205 : f32 to vector<30x126xf32>
    %207 = arith.mulf %206, %9 : vector<30x126xf32>
    %208 = arith.addf %204, %207 : vector<30x126xf32>
    %c4_103 = arith.constant 4 : index
    %c8_104 = arith.constant 8 : index
    %209 = memref.load %arg2[%c4_103, %c8_104] : memref<8x9xf32, #tpu.memory_space<smem>>
    %210 = vector.broadcast %209 : f32 to vector<30x126xf32>
    %211 = arith.mulf %210, %10 : vector<30x126xf32>
    %212 = arith.addf %208, %211 : vector<30x126xf32>
    %c0_105 = arith.constant 0 : index
    %c4_106 = arith.constant 4 : index
    %c0_107 = arith.constant 0 : index
    %c0_108 = arith.constant 0 : index
    %213 = vector.load %arg4[%c0_105, %c4_106, %c0_107, %c0_108] : memref<1x8x30x126xf32, #tpu.memory_space<vmem>>, vector<1x1x30x126xf32>
    %214 = vector.shape_cast %213 : vector<1x1x30x126xf32> to vector<30x126xf32>
    %215 = vector.shape_cast %212 : vector<30x126xf32> to vector<1x1x30x126xf32>
    tpu.vector_store %arg4[%c0_105, %c4_106, %c0_107, %c0_108], %215 {strides = array<i32>} : memref<1x8x30x126xf32, #tpu.memory_space<vmem>>, vector<1x1x30x126xf32>,
    %c5_109 = arith.constant 5 : index
    %216 = memref.load %arg3[%c5_109] : memref<8xf32, #tpu.memory_space<smem>>
    %217 = vector.broadcast %216 : f32 to vector<30x126xf32>
    %c5_110 = arith.constant 5 : index
    %c0_111 = arith.constant 0 : index
    %218 = memref.load %arg2[%c5_110, %c0_111] : memref<8x9xf32, #tpu.memory_space<smem>>
    %219 = vector.broadcast %218 : f32 to vector<30x126xf32>
    %220 = arith.mulf %219, %2 : vector<30x126xf32>
    %221 = arith.addf %217, %220 : vector<30x126xf32>
    %c5_112 = arith.constant 5 : index
    %c1_113 = arith.constant 1 : index
    %222 = memref.load %arg2[%c5_112, %c1_113] : memref<8x9xf32, #tpu.memory_space<smem>>
    %223 = vector.broadcast %222 : f32 to vector<30x126xf32>
    %224 = arith.mulf %223, %3 : vector<30x126xf32>
    %225 = arith.addf %221, %224 : vector<30x126xf32>
    %c5_114 = arith.constant 5 : index
    %c2_115 = arith.constant 2 : index
    %226 = memref.load %arg2[%c5_114, %c2_115] : memref<8x9xf32, #tpu.memory_space<smem>>
    %227 = vector.broadcast %226 : f32 to vector<30x126xf32>
    %228 = arith.mulf %227, %4 : vector<30x126xf32>
    %229 = arith.addf %225, %228 : vector<30x126xf32>
    %c5_116 = arith.constant 5 : index
    %c3_117 = arith.constant 3 : index
    %230 = memref.load %arg2[%c5_116, %c3_117] : memref<8x9xf32, #tpu.memory_space<smem>>
    %231 = vector.broadcast %230 : f32 to vector<30x126xf32>
    %232 = arith.mulf %231, %5 : vector<30x126xf32>
    %233 = arith.addf %229, %232 : vector<30x126xf32>
    %c5_118 = arith.constant 5 : index
    %c4_119 = arith.constant 4 : index
    %234 = memref.load %arg2[%c5_118, %c4_119] : memref<8x9xf32, #tpu.memory_space<smem>>
    %235 = vector.broadcast %234 : f32 to vector<30x126xf32>
    %236 = arith.mulf %235, %6 : vector<30x126xf32>
    %237 = arith.addf %233, %236 : vector<30x126xf32>
    %c5_120 = arith.constant 5 : index
    %c5_121 = arith.constant 5 : index
    %238 = memref.load %arg2[%c5_120, %c5_121] : memref<8x9xf32, #tpu.memory_space<smem>>
    %239 = vector.broadcast %238 : f32 to vector<30x126xf32>
    %240 = arith.mulf %239, %7 : vector<30x126xf32>
    %241 = arith.addf %237, %240 : vector<30x126xf32>
    %c5_122 = arith.constant 5 : index
    %c6_123 = arith.constant 6 : index
    %242 = memref.load %arg2[%c5_122, %c6_123] : memref<8x9xf32, #tpu.memory_space<smem>>
    %243 = vector.broadcast %242 : f32 to vector<30x126xf32>
    %244 = arith.mulf %243, %8 : vector<30x126xf32>
    %245 = arith.addf %241, %244 : vector<30x126xf32>
    %c5_124 = arith.constant 5 : index
    %c7_125 = arith.constant 7 : index
    %246 = memref.load %arg2[%c5_124, %c7_125] : memref<8x9xf32, #tpu.memory_space<smem>>
    %247 = vector.broadcast %246 : f32 to vector<30x126xf32>
    %248 = arith.mulf %247, %9 : vector<30x126xf32>
    %249 = arith.addf %245, %248 : vector<30x126xf32>
    %c5_126 = arith.constant 5 : index
    %c8_127 = arith.constant 8 : index
    %250 = memref.load %arg2[%c5_126, %c8_127] : memref<8x9xf32, #tpu.memory_space<smem>>
    %251 = vector.broadcast %250 : f32 to vector<30x126xf32>
    %252 = arith.mulf %251, %10 : vector<30x126xf32>
    %253 = arith.addf %249, %252 : vector<30x126xf32>
    %c0_128 = arith.constant 0 : index
    %c5_129 = arith.constant 5 : index
    %c0_130 = arith.constant 0 : index
    %c0_131 = arith.constant 0 : index
    %254 = vector.load %arg4[%c0_128, %c5_129, %c0_130, %c0_131] : memref<1x8x30x126xf32, #tpu.memory_space<vmem>>, vector<1x1x30x126xf32>
    %255 = vector.shape_cast %254 : vector<1x1x30x126xf32> to vector<30x126xf32>
    %256 = vector.shape_cast %253 : vector<30x126xf32> to vector<1x1x30x126xf32>
    tpu.vector_store %arg4[%c0_128, %c5_129, %c0_130, %c0_131], %256 {strides = array<i32>} : memref<1x8x30x126xf32, #tpu.memory_space<vmem>>, vector<1x1x30x126xf32>,
    %c6_132 = arith.constant 6 : index
    %257 = memref.load %arg3[%c6_132] : memref<8xf32, #tpu.memory_space<smem>>
    %258 = vector.broadcast %257 : f32 to vector<30x126xf32>
    %c6_133 = arith.constant 6 : index
    %c0_134 = arith.constant 0 : index
    %259 = memref.load %arg2[%c6_133, %c0_134] : memref<8x9xf32, #tpu.memory_space<smem>>
    %260 = vector.broadcast %259 : f32 to vector<30x126xf32>
    %261 = arith.mulf %260, %2 : vector<30x126xf32>
    %262 = arith.addf %258, %261 : vector<30x126xf32>
    %c6_135 = arith.constant 6 : index
    %c1_136 = arith.constant 1 : index
    %263 = memref.load %arg2[%c6_135, %c1_136] : memref<8x9xf32, #tpu.memory_space<smem>>
    %264 = vector.broadcast %263 : f32 to vector<30x126xf32>
    %265 = arith.mulf %264, %3 : vector<30x126xf32>
    %266 = arith.addf %262, %265 : vector<30x126xf32>
    %c6_137 = arith.constant 6 : index
    %c2_138 = arith.constant 2 : index
    %267 = memref.load %arg2[%c6_137, %c2_138] : memref<8x9xf32, #tpu.memory_space<smem>>
    %268 = vector.broadcast %267 : f32 to vector<30x126xf32>
    %269 = arith.mulf %268, %4 : vector<30x126xf32>
    %270 = arith.addf %266, %269 : vector<30x126xf32>
    %c6_139 = arith.constant 6 : index
    %c3_140 = arith.constant 3 : index
    %271 = memref.load %arg2[%c6_139, %c3_140] : memref<8x9xf32, #tpu.memory_space<smem>>
    %272 = vector.broadcast %271 : f32 to vector<30x126xf32>
    %273 = arith.mulf %272, %5 : vector<30x126xf32>
    %274 = arith.addf %270, %273 : vector<30x126xf32>
    %c6_141 = arith.constant 6 : index
    %c4_142 = arith.constant 4 : index
    %275 = memref.load %arg2[%c6_141, %c4_142] : memref<8x9xf32, #tpu.memory_space<smem>>
    %276 = vector.broadcast %275 : f32 to vector<30x126xf32>
    %277 = arith.mulf %276, %6 : vector<30x126xf32>
    %278 = arith.addf %274, %277 : vector<30x126xf32>
    %c6_143 = arith.constant 6 : index
    %c5_144 = arith.constant 5 : index
    %279 = memref.load %arg2[%c6_143, %c5_144] : memref<8x9xf32, #tpu.memory_space<smem>>
    %280 = vector.broadcast %279 : f32 to vector<30x126xf32>
    %281 = arith.mulf %280, %7 : vector<30x126xf32>
    %282 = arith.addf %278, %281 : vector<30x126xf32>
    %c6_145 = arith.constant 6 : index
    %c6_146 = arith.constant 6 : index
    %283 = memref.load %arg2[%c6_145, %c6_146] : memref<8x9xf32, #tpu.memory_space<smem>>
    %284 = vector.broadcast %283 : f32 to vector<30x126xf32>
    %285 = arith.mulf %284, %8 : vector<30x126xf32>
    %286 = arith.addf %282, %285 : vector<30x126xf32>
    %c6_147 = arith.constant 6 : index
    %c7_148 = arith.constant 7 : index
    %287 = memref.load %arg2[%c6_147, %c7_148] : memref<8x9xf32, #tpu.memory_space<smem>>
    %288 = vector.broadcast %287 : f32 to vector<30x126xf32>
    %289 = arith.mulf %288, %9 : vector<30x126xf32>
    %290 = arith.addf %286, %289 : vector<30x126xf32>
    %c6_149 = arith.constant 6 : index
    %c8_150 = arith.constant 8 : index
    %291 = memref.load %arg2[%c6_149, %c8_150] : memref<8x9xf32, #tpu.memory_space<smem>>
    %292 = vector.broadcast %291 : f32 to vector<30x126xf32>
    %293 = arith.mulf %292, %10 : vector<30x126xf32>
    %294 = arith.addf %290, %293 : vector<30x126xf32>
    %c0_151 = arith.constant 0 : index
    %c6_152 = arith.constant 6 : index
    %c0_153 = arith.constant 0 : index
    %c0_154 = arith.constant 0 : index
    %295 = vector.load %arg4[%c0_151, %c6_152, %c0_153, %c0_154] : memref<1x8x30x126xf32, #tpu.memory_space<vmem>>, vector<1x1x30x126xf32>
    %296 = vector.shape_cast %295 : vector<1x1x30x126xf32> to vector<30x126xf32>
    %297 = vector.shape_cast %294 : vector<30x126xf32> to vector<1x1x30x126xf32>
    tpu.vector_store %arg4[%c0_151, %c6_152, %c0_153, %c0_154], %297 {strides = array<i32>} : memref<1x8x30x126xf32, #tpu.memory_space<vmem>>, vector<1x1x30x126xf32>,
    %c7_155 = arith.constant 7 : index
    %298 = memref.load %arg3[%c7_155] : memref<8xf32, #tpu.memory_space<smem>>
    %299 = vector.broadcast %298 : f32 to vector<30x126xf32>
    %c7_156 = arith.constant 7 : index
    %c0_157 = arith.constant 0 : index
    %300 = memref.load %arg2[%c7_156, %c0_157] : memref<8x9xf32, #tpu.memory_space<smem>>
    %301 = vector.broadcast %300 : f32 to vector<30x126xf32>
    %302 = arith.mulf %301, %2 : vector<30x126xf32>
    %303 = arith.addf %299, %302 : vector<30x126xf32>
    %c7_158 = arith.constant 7 : index
    %c1_159 = arith.constant 1 : index
    %304 = memref.load %arg2[%c7_158, %c1_159] : memref<8x9xf32, #tpu.memory_space<smem>>
    %305 = vector.broadcast %304 : f32 to vector<30x126xf32>
    %306 = arith.mulf %305, %3 : vector<30x126xf32>
    %307 = arith.addf %303, %306 : vector<30x126xf32>
    %c7_160 = arith.constant 7 : index
    %c2_161 = arith.constant 2 : index
    %308 = memref.load %arg2[%c7_160, %c2_161] : memref<8x9xf32, #tpu.memory_space<smem>>
    %309 = vector.broadcast %308 : f32 to vector<30x126xf32>
    %310 = arith.mulf %309, %4 : vector<30x126xf32>
    %311 = arith.addf %307, %310 : vector<30x126xf32>
    %c7_162 = arith.constant 7 : index
    %c3_163 = arith.constant 3 : index
    %312 = memref.load %arg2[%c7_162, %c3_163] : memref<8x9xf32, #tpu.memory_space<smem>>
    %313 = vector.broadcast %312 : f32 to vector<30x126xf32>
    %314 = arith.mulf %313, %5 : vector<30x126xf32>
    %315 = arith.addf %311, %314 : vector<30x126xf32>
    %c7_164 = arith.constant 7 : index
    %c4_165 = arith.constant 4 : index
    %316 = memref.load %arg2[%c7_164, %c4_165] : memref<8x9xf32, #tpu.memory_space<smem>>
    %317 = vector.broadcast %316 : f32 to vector<30x126xf32>
    %318 = arith.mulf %317, %6 : vector<30x126xf32>
    %319 = arith.addf %315, %318 : vector<30x126xf32>
    %c7_166 = arith.constant 7 : index
    %c5_167 = arith.constant 5 : index
    %320 = memref.load %arg2[%c7_166, %c5_167] : memref<8x9xf32, #tpu.memory_space<smem>>
    %321 = vector.broadcast %320 : f32 to vector<30x126xf32>
    %322 = arith.mulf %321, %7 : vector<30x126xf32>
    %323 = arith.addf %319, %322 : vector<30x126xf32>
    %c7_168 = arith.constant 7 : index
    %c6_169 = arith.constant 6 : index
    %324 = memref.load %arg2[%c7_168, %c6_169] : memref<8x9xf32, #tpu.memory_space<smem>>
    %325 = vector.broadcast %324 : f32 to vector<30x126xf32>
    %326 = arith.mulf %325, %8 : vector<30x126xf32>
    %327 = arith.addf %323, %326 : vector<30x126xf32>
    %c7_170 = arith.constant 7 : index
    %c7_171 = arith.constant 7 : index
    %328 = memref.load %arg2[%c7_170, %c7_171] : memref<8x9xf32, #tpu.memory_space<smem>>
    %329 = vector.broadcast %328 : f32 to vector<30x126xf32>
    %330 = arith.mulf %329, %9 : vector<30x126xf32>
    %331 = arith.addf %327, %330 : vector<30x126xf32>
    %c7_172 = arith.constant 7 : index
    %c8_173 = arith.constant 8 : index
    %332 = memref.load %arg2[%c7_172, %c8_173] : memref<8x9xf32, #tpu.memory_space<smem>>
    %333 = vector.broadcast %332 : f32 to vector<30x126xf32>
    %334 = arith.mulf %333, %10 : vector<30x126xf32>
    %335 = arith.addf %331, %334 : vector<30x126xf32>
    %c0_174 = arith.constant 0 : index
    %c7_175 = arith.constant 7 : index
    %c0_176 = arith.constant 0 : index
    %c0_177 = arith.constant 0 : index
    %336 = vector.load %arg4[%c0_174, %c7_175, %c0_176, %c0_177] : memref<1x8x30x126xf32, #tpu.memory_space<vmem>>, vector<1x1x30x126xf32>
    %337 = vector.shape_cast %336 : vector<1x1x30x126xf32> to vector<30x126xf32>
    %338 = vector.shape_cast %335 : vector<30x126xf32> to vector<1x1x30x126xf32>
    tpu.vector_store %arg4[%c0_174, %c7_175, %c0_176, %c0_177], %338 {strides = array<i32>} : memref<1x8x30x126xf32, #tpu.memory_space<vmem>>, vector<1x1x30x126xf32>,
    return
  }
  func.func @transform_0(%arg0: i32) -> (i32, i32, i32) {
    %c0_i32 = arith.constant 0 : i32
    %c0_i32_0 = arith.constant 0 : i32
    %c0_i32_1 = arith.constant 0 : i32
    return %arg0, %c0_i32, %c0_i32_0 : i32, i32, i32
  }
  func.func @transform_1(%arg0: i32) -> (i32, i32) {
    %c0_i32 = arith.constant 0 : i32
    %c0_i32_0 = arith.constant 0 : i32
    %c0_i32_1 = arith.constant 0 : i32
    return %c0_i32, %c0_i32_0 : i32, i32
  }
  func.func @transform_2(%arg0: i32) -> i32 {
    %c0_i32 = arith.constant 0 : i32
    %c0_i32_0 = arith.constant 0 : i32
    return %c0_i32 : i32
  }
  func.func @transform_3(%arg0: i32) -> (i32, i32, i32, i32) {
    %c0_i32 = arith.constant 0 : i32
    %c0_i32_0 = arith.constant 0 : i32
    %c0_i32_1 = arith.constant 0 : i32
    %c0_i32_2 = arith.constant 0 : i32
    return %arg0, %c0_i32, %c0_i32_0, %c0_i32_1 : i32, i32, i32, i32
  }
}

</mosaic_0001>

<bundles_post_ra>
// kernel: tpu_custom_call.1
= control target key start
LH: loop header
LB: loop body
LE: loop exit
PB: predicated region body
PF: predicated region fallthrough
CT: control target
= control target key end

     0   :  { %8 = vsyncpa [#allocation3], 0  ;;  %s3927_s0 = inlined_call_operand.hbm [shape: f32[2,32,128], index: 0, kind: input, shape index: {}]   ;;  %s3928_s1 = inlined_call_operand.hbm [shape: f32[8,9], index: 1, kind: input, shape index: {}]   ;;  %s3929_s2 = inlined_call_operand.vmem [shape: f32[8], index: 2, kind: input, shape index: {}]   ;;  %s3930_s3 = inlined_call_operand.vmem [shape: f32[2,8,30,126], index: 3, kind: output, shape index: {}]  }
   0x1   :  { %10 = vsyncpa [#allocation3 + $0x1], 0 }
   0x2   :  { %11 = vsyncpa [#allocation4], 0 }
   0x3   :  { %12 = vsyncpa [#allocation5], 0  ;;  %s2643_s12 = smov 0   ;;  %s2645_s13 = smov 0  }
   0x4   :  { %s2647_s14 = smov 0   ;;  %s2649_s15 = smov 0  }
   0x5 LB: > { %s2662_s16 = sadd.s32 4294967295, %s2614_s15   ;;  %s2665_s17 = sadd.s32 1, %s2614_s15   ;;  %s2614_s15 = sphi %s2649_s15, %s3961_s15   ;;  %s2610_s14 = sphi %s2647_s14, %s3960_s14   ;;  %s2606_s13 = sphi %s2645_s13, %s3959_s13   ;;  %s2602_s12 = sphi %s2643_s12, %s3958_s12  }
   0x6   : > { %s22_s18 = ssub.s32 %s2614_s15, %s2665_s17  ;;  %s25_s19 = sadd.s32 1, %s2610_s14 }
   0x7   : > { %p23_p0 = scmp.eq.s32.totalorder %s22_s18, 0  ;;  %p32_p1 = scmp.ne.s32.totalorder %s2610_s14, %s2606_s13 }
   0x8   : > { %p33_p2 = scmp.eq.s32.totalorder %s2614_s15, 0  ;;  %p38_p3 = scmp.ne.s32.totalorder %s2606_s13, %s2602_s12 }
   0x9   : > { %s2675_s20 = scalar_select %p23_p0, %s2610_s14, %s25_s19  }
   0xa   : > { %p34_p4 = por %p33_p2, %p32_p1  ;;  %p3931_p5 = scmp.eq.s32.totalorder %s2662_s16, 0 }
   0xb   : > { %p2323_p6 = scmp.ge.s32.totalorder %s2614_s15, 1  ;;  %p117_p7 = scmp.lt.s32.totalorder %s2614_s15, 3 }
   0xc   : > { %p2682_p8 = por %p3931_p5, %p38_p3  ;;  %p2469_p10 = scmp.lt.s32.totalorder %s2614_s15, 2 }
   0xd   : > { %p2686_p9 = pnand %p2323_p6, %p117_p7  ;;  %s139_s25 = sshll.u32 %s3929_s2, 4  ;;  %s140_s25 = int_to_ptr.vmem [resolvable:$true] %s139_s25 }
   0xe   : > { %s3934_s21 = scalar_select %p2682_p8, 1, 0 }
   0xf   : > { %s3935_s22 = scalar_select %p2686_p9, 1, 0 }
  0x10   : > { %p2456_p11 = pneg %p2686_p9  ;;  %p2696_p12 = pnand %p2469_p10, %p34_p4 }
  0x11   : > { %s150_s28 = sand.u32 1, %s2610_s14   ;;  %s2616_s29 = smov [#allocation6]  }
  0x12   : > { %p2702_p13 = pnand %p2456_p11, %p3931_p5  ;;  %s2529_s5 = scalar_lea.vmem %s140_s25, 16 }
  0x13   : > { %p2530_p0 = scmp.ne.s32.totalorder %s140_s25, %s2529_s5  ;;  %p2537_p4 = scmp.lt.s32.totalorder %s140_s25, %s140_s25 }
  0x14   : > { %2459 = dma.hbm_to_smem (!%p2702_p13), %s3928_s1, 128, %s2616_s29, [#allocation4]  }
  0x15   : > { %p2531_p1 = pneg %p2702_p13  ;;  %p2538_p6 = scmp.lt.s32.totalorder %s2529_s5, %s2529_s5 }
  0x17   : > { %p2532_p2 = pnand %p2531_p1, %p2530_p0  ;;  %p2539_p7 = por %p2538_p6, %p2537_p4 }
  0x19   : > { %p2533_p3 = pneg %p2532_p2 }
  0x1b   : > { %p2540_p10 = pnand %p2539_p7, %p2533_p3 }
  0x1d   : > { %2543 = shalt.err (!%p2540_p10)
}
  0x1e   : > { %s2617_s6 = smov [#allocation7]   ;;  %s2327_s7 = sshll.u32 %s150_s28, 5 }
  0x1f   : > { %2462 = dma.vmem_to_smem (!%p2702_p13), %s140_s25, 16, %s2617_s6, [#allocation5]  }
  0x20   : > { %s2444_s8 = sshll.u32 %s2614_s15, 9  ;;  %s154_s12 = scalar_lea.vmem [#allocation2], %s2327_s7 }
  0x21   : > { %s2720_s11 = scalar_lea.hbm %s3927_s0, %s2444_s8  ;;  %s161_s18 = sshll.u32 %s154_s12, 4  ;;  %s2722_s18 = int_to_ptr.vmem [resolvable:$true] %s161_s18 }
  0x22   : > { %s2724_s19 = scalar_lea.sflag [#allocation3], %s150_s28  ;;  %s2544_s23 = scalar_lea.hbm %s2720_s11, 512 }
  0x23   : > { %p2545_p11 = scmp.ne.s32.totalorder %s2720_s11, %s2544_s23  ;;  %p2546_p13 = pneg %p2696_p12 }
  0x24   : > { %s2549_s25 = scalar_lea.hbm %s3927_s0, 1024  ;;  %p2550_p2 = scmp.lt.s32.totalorder %s2720_s11, %s3927_s0 }
  0x25   : > { %p2547_p0 = pnand %p2546_p13, %p2545_p11  ;;  %p2551_p3 = scmp.lt.s32.totalorder %s2549_s25, %s2544_s23 }
  0x27   : > { %p2548_p1 = pneg %p2547_p0  ;;  %p2552_p4 = por %p2551_p3, %p2550_p2 }
  0x29   : > { %p2553_p6 = pnand %p2552_p4, %p2548_p1 }
  0x2b   : > { %2556 = shalt.err (!%p2553_p6)
}
  0x2c   : > { %s2557_s28 = scalar_lea.vmem %s2722_s18, 512  ;;  %s2618_s30 = smov [#allocation2]  }
  0x2d   : > { %p2558_p7 = scmp.ne.s32.totalorder %s2722_s18, %s2557_s28  ;;  %s2562_s4 = sshll.u32 %s2618_s30, 4  ;;  %s2563_s4 = int_to_ptr.vmem [resolvable:$false] %s2562_s4 }
  0x2e   : > { %s2564_s5 = scalar_lea.vmem %s2563_s4, 1024  ;;  %p2565_p0 = scmp.lt.s32.totalorder %s2722_s18, %s2563_s4 }
  0x2f   : > { %p2560_p10 = pnand %p2558_p7, %p2546_p13  ;;  %p2566_p5 = scmp.lt.s32.totalorder %s2564_s5, %s2557_s28 }
  0x31   : > { %p2561_p11 = pneg %p2560_p10  ;;  %p2567_p8 = por %p2566_p5, %p2565_p0 }
  0x33   : > { %p2568_p9 = pnand %p2567_p8, %p2561_p11 }
  0x35   : > { %2571 = shalt.err (!%p2568_p9)
}
  0x36   : > { %s2619_s6 = smov 128   ;;  %s2620_s7 = smov 8  }
  0x37   : > { %2466 = dma.hbm_to_vmem [thread:$0]  (!%p2696_p12), %s2720_s11, 512, %s2722_s18, %s2724_s19, %s2619_s6, %s2619_s6, %s2620_s7  }
  0x38   : > { %p3938_p13 = scmp.ne.s32.totalorder %s3935_s22, 0 }
  0x3a   : > { %173 = sbr.rel (%p3938_p13) target bundleno = 584 (0x248), region = 32 }
  0x3f   : > { %s175_s8 = sand.u32 1, %s2606_s13   ;;  %p3939_p5 = scmp.ne.s32.totalorder %s3934_s21, 0 }
  0x40   : > { %s2331_s9 = sshll.u32 %s175_s8, 5  ;;  %s176_s10 = scalar_lea.sflag [#allocation3], %s175_s8 }
  0x41   : > { %s2748_s12 = scalar_lea.vmem [#allocation2], %s2331_s9 }
  0x42   : > { %2589 = dma.done.wait (%p3939_p5), %s176_s10, 512  }
  0x43   : > { %2591 = vsyncadd (%p3939_p5), %s176_s10, 4294966784  ;;  %p3940_p8 = scmp.eq.s32.totalorder %s2662_s16, 0 }
  0x45   : > { %2593 = dma.done.wait (%p3940_p8), [#allocation4], 128   ;;  %p3941_p9 = pmov %p3940_p8 }
  0x46   : > { %p3942_p12 = pmov %p3940_p8 }
  0x47   : > { %2595 = vsyncadd (%p3941_p9), [#allocation4], 4294967168 }
  0x48   : > { %2597 = dma.done.wait (%p3942_p12), [#allocation5], 16   ;;  %p3943_p1 = pmov %p3940_p8 }
  0x4a   : > { %2599 = vsyncadd (%p3943_p1), [#allocation5], 4294967280 }
  0x4b   : > { %192 = sfence }
  0x4c   : > { %s2336_s22 = sld [smem:[#allocation6 + $0x1]]  ;;  %v2763_v0 = vld [vmem:[%s2748_s12 + $0x10] sm:$0xff]  ;;  %v2766_v1 = vld [vmem:[%s2748_s12] sm:$0xff]  ;;  %v2769_v3 = vld [vmem:[%s2748_s12 + $0x18] sm:$0xff]  ;;  %s2621_s11 = smov 127   ;;  %vm294_vm0 = vcmask 1046528  }
  0x4d   : > { %s2337_s21 = sld [smem:[#allocation6 + $0x2]]  ;;  %v2772_v4 = vld [vmem:[%s2748_s12 + $0x8] sm:$0xff]  ;;  %s2622_s19 = smov 126   ;;  %vm386_vm1 = vcmask 1045504   ;;  %vm468_vm2 = vcmask 1031168   ;;  %vm472_vm3 = vcmask 1029120  }
  0x4e   : > { %s2339_s26 = sld [smem:[#allocation6 + $0x4]]  ;;  %p211_p2 = scmp.lt.s32.totalorder %s2662_s16, 1 }
  0x4f   : > { %s2340_s18 = sld [smem:[#allocation6 + $0x5]] }
  0x50   : > { %s2342_s23 = sld [smem:[#allocation6 + $0x7]]  ;;  %s3963_s16 = smov (!%p211_p2, %s2662_s16), 1 }
  0x51   : > { %s2343_s15 = sld [smem:[#allocation6 + $0x8]] }
  0x52   : > { %v233_v2 = vstv %s2336_s22  ;;  %s2346_s24 = sld [smem:[#allocation6 + $0x81]] }
  0x53   : > { %v236_v5 = vmul.f32 %v233_v2, %v2763_v0  ;;  %v234_v6 = vmul.f32 %v233_v2, %v2766_v1  ;;  %v237_v7 = vmul.f32 %v233_v2, %v2769_v3  ;;  %v235_v8 = vmul.f32 %v233_v2, %v2772_v4  ;;  %s2347_s25 = sld [smem:[#allocation6 + $0x82]] }
  0x54   : > { %v259_v9 = vstv %s2337_s21  ;;  %v311_v10 = vstv %s2339_s26  ;;  %s2349_s27 = sld [smem:[#allocation6 + $0x84]] }
  0x55   : > { %246 = vrot.lane.b32.xlu1 %v236_v5, %s2621_s11  ;;  %242 = vrot.lane.b32.xlu0 %v234_v6, %s2621_s11  ;;  %v261_v11 = vmul.f32 %v259_v9, %v2772_v4  ;;  %v260_v12 = vmul.f32 %v259_v9, %v2766_v1  ;;  %v313_v13 = vmul.f32 %v311_v10, %v2772_v4  ;;  %v344_v18 = vstv %s2340_s18  ;;  %s2350_s29 = sld [smem:[#allocation6 + $0x85]] }
  0x56   : > { %v314_v14 = vmul.f32 %v311_v10, %v2763_v0  ;;  %v312_v15 = vmul.f32 %v311_v10, %v2766_v1  ;;  %v263_v16 = vmul.f32 %v259_v9, %v2769_v3  ;;  %v262_v17 = vmul.f32 %v259_v9, %v2763_v0  ;;  %s2352_s28 = sld [smem:[#allocation6 + $0x87]] }
  0x57   : > { %v321_v19 = vrot.slane %v313_v13, 1  ;;  %v315_v22 = vmul.f32 %v311_v10, %v2769_v3  ;;  %v346_v23 = vmul.f32 %v344_v18, %v2772_v4  ;;  %v347_v24 = vmul.f32 %v344_v18, %v2763_v0  ;;  %s2353_s30 = sld [smem:[#allocation6 + $0x88]] }
  0x58   : > { %v323_v20 = vrot.slane %v314_v14, 1  ;;  %v320_v21 = vrot.slane %v312_v15, 1  ;;  %v345_v28 = vmul.f32 %v344_v18, %v2766_v1  ;;  %v348_v31 = vmul.f32 %v344_v18, %v2769_v3  ;;  %s2360_s4 = sld [smem:[#allocation6 + $0x101]] }
  0x59   : > { %248 = vrot.lane.b32.xlu1 %v237_v7, %s2621_s11  ;;  %244 = vrot.lane.b32.xlu0 %v235_v8, %s2621_s11  ;;  %v325_v27 = vrot.slane %v315_v22, 1  ;;  %v354_v29 = vrot.slane %v346_v23, 1  ;;  %v356_v30 = vrot.slane %v347_v24, 1  ;;  %v403_v34 = vstv %s2342_s23  ;;  %s2361_s5 = sld [smem:[#allocation6 + $0x102]] }
  0x5a   : > { %v324_v25 = vsel %vm294_vm0, %v321_v19, %v323_v20  ;;  %v322_v26 = vsel %vm294_vm0, %v320_v21, %v321_v19  ;;  %v353_v33 = vrot.slane %v345_v28, 1  ;;  %v358_v36 = vrot.slane %v348_v31, 1  ;;  %s2363_s6 = sld [smem:[#allocation6 + $0x104]] }
  0x5b   : > { %v326_v32 = vsel %vm294_vm0, %v323_v20, %v325_v27  ;;  %v357_v35 = vsel %vm294_vm0, %v354_v29, %v356_v30  ;;  %v405_v38 = vmul.f32 %v403_v34, %v2772_v4  ;;  %v406_v39 = vmul.f32 %v403_v34, %v2763_v0  ;;  %s2364_s7 = sld [smem:[#allocation6 + $0x105]] }
  0x5c   : > { %v355_v37 = vsel %vm294_vm0, %v353_v33, %v354_v29  ;;  %v404_v40 = vmul.f32 %v403_v34, %v2766_v1  ;;  %v359_v41 = vsel %vm294_vm0, %v356_v30, %v358_v36  ;;  %v407_v42 = vmul.f32 %v403_v34, %v2769_v3  ;;  %s2366_s8 = sld [smem:[#allocation6 + $0x107]] }
  0x5d   : > { %270 = vrot.lane.b32.xlu1 %v261_v11, %s2622_s19  ;;  %268 = vrot.lane.b32.xlu0 %v260_v12, %s2622_s19  ;;  %v413_v43 = vrot.slane %v405_v38, 2  ;;  %v415_v44 = vrot.slane %v406_v39, 2  ;;  %v436_v46 = vstv %s2343_s15  ;;  %v487_v62 = vstv %s2346_s24  ;;  %s2367_s9 = sld [smem:[#allocation6 + $0x108]] }
  0x5e   : > { %v412_v45 = vrot.slane %v404_v40, 2  ;;  %v417_v47 = vrot.slane %v407_v42, 2  ;;  %v438_v48 = vmul.f32 %v436_v46, %v2772_v4  ;;  %v439_v51 = vmul.f32 %v436_v46, %v2763_v0  ;;  %s222_s10 = sld [smem:[#allocation6]] }
  0x5f   : > { %v416_v49 = vsel %vm386_vm1, %v413_v43, %v415_v44  ;;  %v437_v52 = vmul.f32 %v436_v46, %v2766_v1  ;;  %v440_v53 = vmul.f32 %v436_v46, %v2769_v3  ;;  %v489_v63 = vmul.f32 %v487_v62, %v2772_v4  ;;  %s220_s22 = sld [smem:[#allocation7]] }
  0x60   : > { %v414_v50 = vsel %vm386_vm1, %v412_v45, %v413_v43  ;;  %v418_v54 = vsel %vm386_vm1, %v415_v44, %v417_v47  ;;  %v446_v55 = vrot.slane %v438_v48, 2  ;;  %v448_v56 = vrot.slane %v439_v51, 2  ;;  %s2338_s21 = sld [smem:[#allocation6 + $0x3]] }
  0x61   : > { %274 = vrot.lane.b32.xlu1 %v263_v16, %s2622_s19  ;;  %272 = vrot.lane.b32.xlu0 %v262_v17, %s2622_s19  ;;  %v445_v57 = vrot.slane %v437_v52, 2  ;;  %v450_v60 = vrot.slane %v440_v53, 2  ;;  %v488_v2 = vmul.f32 %v487_v62, %v2766_v1  ;;  %v491_v5 = vmul.f32 %v487_v62, %v2769_v3  ;;  %s2957_s26 = sld [smem:[#allocation6 + $0x6]] }
  0x62   : > { %v449_v58 = vsel %vm386_vm1, %v446_v55, %v448_v56  ;;  %v490_v6 = vmul.f32 %v487_v62, %v2763_v0  ;;  %v513_v7 = vstv %s2347_s25  ;;  %v564_v8 = vstv %s2349_s27  ;;  %s2374_s18 = sld [smem:[#allocation6 + $0x181]]  ;;  %s2445_s25 = sshll.u32 %s3963_s16, 8 }
  0x63   : > { %v447_v59 = vsel %vm386_vm1, %v445_v57, %v446_v55  ;;  %v451_v61 = vsel %vm386_vm1, %v448_v56, %v450_v60  ;;  %v515_v9 = vmul.f32 %v513_v7, %v2772_v4  ;;  %v514_v10 = vmul.f32 %v513_v7, %v2766_v1  ;;  %s2978_s23 = sld [smem:[#allocation6 + $0x182]]  ;;  %s3050_s16 = scalar_lea.vmem %s3930_s3, %s2445_s25 }
  0x64   : > { %v566_v11 = vmul.f32 %v564_v8, %v2772_v4  ;;  %v567_v12 = vmul.f32 %v564_v8, %v2763_v0  ;;  %v565_v13 = vmul.f32 %v564_v8, %v2766_v1  ;;  %v517_v14 = vmul.f32 %v513_v7, %v2769_v3  ;;  %s2991_s15 = sld [smem:[#allocation6 + $0x184]] }
  0x65   : > { %329 = vrot.lane.b32.xlu1 %v324_v25, %s2621_s11  ;;  %327 = vrot.lane.b32.xlu0 %v322_v26, %s2621_s11  ;;  %v516_v15 = vmul.f32 %v513_v7, %v2763_v0  ;;  %v568_v16 = vmul.f32 %v564_v8, %v2769_v3  ;;  %v597_v20 = vstv %s2350_s29  ;;  %v688_v44 = vstv %s2353_s30  ;;  %s3020_s24 = sld [smem:[#allocation6 + $0x185]] }
  0x66   : > { %v574_v17 = vrot.slane %v566_v11, 1  ;;  %v576_v18 = vrot.slane %v567_v12, 1  ;;  %v573_v19 = vrot.slane %v565_v13, 1  ;;  %v599_v21 = vmul.f32 %v597_v20, %v2772_v4  ;;  %s3045_s27 = sld [smem:[#allocation6 + $0x187]] }
  0x67   : > { %v600_v22 = vmul.f32 %v597_v20, %v2763_v0  ;;  %v578_v25 = vrot.slane %v568_v16, 1  ;;  %v598_v26 = vmul.f32 %v597_v20, %v2766_v1  ;;  %v601_v29 = vmul.f32 %v597_v20, %v2769_v3  ;;  %s2381_s30 = sld [smem:[#allocation6 + $0x188]] }
  0x68   : > { %v577_v23 = vsel %vm294_vm0, %v574_v17, %v576_v18  ;;  %v575_v24 = vsel %vm294_vm0, %v573_v19, %v574_v17  ;;  %v690_v45 = vmul.f32 %v688_v44, %v2772_v4  ;;  %v691_v46 = vmul.f32 %v688_v44, %v2763_v0  ;;  %s3261_s25 = sld [smem:[#allocation6 + $0x281]] }
  0x69   : > { %333 = vrot.lane.b32.xlu1 %v325_v27, %s2621_s11  ;;  %331 = vrot.lane.b32.xlu0 %v326_v32, %s2621_s11  ;;  %v607_v27 = vrot.slane %v599_v21, 1  ;;  %v609_v28 = vrot.slane %v600_v22, 1  ;;  %v579_v30 = vsel %vm294_vm0, %v576_v18, %v578_v25  ;;  %v606_v31 = vrot.slane %v598_v26, 1  ;;  %s3291_s29 = sld [smem:[#allocation6 + $0x284]] }
  0x6a   : > { %v655_v32 = vstv %s2352_s28  ;;  %v611_v34 = vrot.slane %v601_v29, 1  ;;  %v692_v51 = vmul.f32 %v688_v44, %v2769_v3  ;;  %v698_v53 = vrot.slane %v690_v45, 2  ;;  %s3317_s28 = sld [smem:[#allocation6 + $0x285]] }
  0x6b   : > { %v610_v33 = vsel %vm294_vm0, %v607_v27, %v609_v28  ;;  %v656_v38 = vmul.f32 %v655_v32, %v2766_v1  ;;  %v659_v40 = vmul.f32 %v655_v32, %v2769_v3  ;;  %v848_v18 = vstv %s2364_s7  ;;  %s3106_s7 = sld [smem:[#allocation6 + $0x86]] }
  0x6c   : > { %v612_v39 = vsel %vm294_vm0, %v609_v28, %v611_v34  ;;  %v850_v22 = vmul.f32 %v848_v18, %v2772_v4  ;;  %v906_v26 = vstv %s2366_s8  ;;  %s2388_s8 = sld [smem:[#allocation6 + $0x201]] }
  0x6d   : > { %362 = vrot.lane.b32.xlu1 %v357_v35, %s2622_s19  ;;  %360 = vrot.lane.b32.xlu0 %v355_v37, %s2622_s19  ;;  %v608_v35 = vsel %vm294_vm0, %v606_v31, %v607_v27  ;;  %v658_v37 = vmul.f32 %v655_v32, %v2763_v0  ;;  %v664_v43 = vrot.slane %v656_v38, 2  ;;  %v910_v45 = vmul.f32 %v906_v26, %v2769_v3 }
  0x6e   : > { %v858_v27 = vrot.slane %v850_v22, 1 }
  0x6f   : > { %v667_v42 = vrot.slane %v658_v37, 2 }
  0x71   : > { %366 = vrot.lane.b32.xlu1 %v358_v36, %s2622_s19  ;;  %364 = vrot.lane.b32.xlu0 %v359_v41, %s2622_s19  ;;  %v657_v36 = vmul.f32 %v655_v32, %v2772_v4 }
  0x73   : > { %v665_v41 = vrot.slane %v657_v36, 2 }
  0x75   : > { %421 = vrot.lane.b32.xlu1 %v416_v49, %s2621_s11  ;;  %419 = vrot.lane.b32.xlu0 %v414_v50, %s2621_s11  ;;  %v666_v48 = vsel %vm386_vm1, %v664_v43, %v665_v41  ;;  %v669_v49 = vrot.slane %v659_v40, 2  ;;  %v689_v50 = vmul.f32 %v688_v44, %v2766_v1 }
  0x77   : > { %v670_v52 = vsel %vm386_vm1, %v667_v42, %v669_v49  ;;  %v697_v55 = vrot.slane %v689_v50, 2 }
  0x79   : > { %425 = vrot.lane.b32.xlu1 %v417_v47, %s2621_s11  ;;  %423 = vrot.lane.b32.xlu0 %v418_v54, %s2621_s11  ;;  %v668_v47 = vsel %vm386_vm1, %v665_v41, %v667_v42  ;;  %v700_v54 = vrot.slane %v691_v46, 2  ;;  %v699_v57 = vsel %vm386_vm1, %v697_v55, %v698_v53 }
  0x7b   : > { %v701_v56 = vsel %vm386_vm1, %v698_v53, %v700_v54 }
  0x7d   : > { %454 = vrot.lane.b32.xlu1 %v449_v58, %s2622_s19  ;;  %452 = vrot.lane.b32.xlu0 %v447_v59, %s2622_s19  ;;  %v702_v58 = vrot.slane %v692_v51, 2 }
  0x7f   : > { %v703_v59 = vsel %vm386_vm1, %v700_v54, %v702_v58 }
  0x81   : > { %458 = vrot.lane.b32.xlu1 %v450_v60, %s2622_s19  ;;  %456 = vrot.lane.b32.xlu0 %v451_v61, %s2622_s19  ;;  %v738_v60 = vstv %s2360_s4  ;;  %s2345_s4 = sld [smem:[#allocation6 + $0x80]] }
  0x82   : > { %v740_v61 = vmul.f32 %v738_v60, %v2772_v4  ;;  %v739_v62 = vmul.f32 %v738_v60, %v2766_v1 }
  0x85   : > { %498 = vrot.lane.b32.xlu1 %v489_v63, %s2621_s11  ;;  %496 = vrot.lane.b32.xlu0 %v488_v2, %s2621_s11  ;;  %v742_v63 = vmul.f32 %v738_v60, %v2769_v3  ;;  %v741_v2 = vmul.f32 %v738_v60, %v2763_v0 }
  0x89   : > { %502 = vrot.lane.b32.xlu1 %v491_v5, %s2621_s11  ;;  %500 = vrot.lane.b32.xlu0 %v490_v6, %s2621_s11  ;;  %v764_v5 = vstv %s2361_s5  ;;  %v815_v6 = vstv %s2363_s6  ;;  %s2344_s5 = sld [smem:[#allocation7 + $0x1]] }
  0x8a   : > { %v766_v7 = vmul.f32 %v764_v5, %v2772_v4  ;;  %v765_v8 = vmul.f32 %v764_v5, %v2766_v1  ;;  %v816_v11 = vmul.f32 %v815_v6, %v2766_v1  ;;  %v768_v12 = vmul.f32 %v764_v5, %v2769_v3  ;;  %s2348_s6 = sld [smem:[#allocation6 + $0x83]] }
  0x8b   : > { %v767_v13 = vmul.f32 %v764_v5, %v2763_v0  ;;  %v819_v16 = vmul.f32 %v815_v6, %v2769_v3 }
  0x8c   : > { %v824_v17 = vrot.slane %v816_v11, 1 }
  0x8d   : > { %524 = vrot.lane.b32.xlu1 %v515_v9, %s2622_s19  ;;  %522 = vrot.lane.b32.xlu0 %v514_v10, %s2622_s19  ;;  %v817_v9 = vmul.f32 %v815_v6, %v2772_v4  ;;  %v818_v10 = vmul.f32 %v815_v6, %v2763_v0  ;;  %v829_v20 = vrot.slane %v819_v16, 1 }
  0x91   : > { %528 = vrot.lane.b32.xlu1 %v517_v14, %s2622_s19  ;;  %526 = vrot.lane.b32.xlu0 %v516_v15, %s2622_s19  ;;  %v825_v14 = vrot.slane %v817_v9, 1  ;;  %v827_v15 = vrot.slane %v818_v10, 1 }
  0x93   : > { %v828_v19 = vsel %vm294_vm0, %v825_v14, %v827_v15  ;;  %v826_v21 = vsel %vm294_vm0, %v824_v17, %v825_v14 }
  0x95   : > { %582 = vrot.lane.b32.xlu1 %v577_v23, %s2621_s11  ;;  %580 = vrot.lane.b32.xlu0 %v575_v24, %s2621_s11  ;;  %v851_v23 = vmul.f32 %v848_v18, %v2763_v0  ;;  %v849_v24 = vmul.f32 %v848_v18, %v2766_v1 }
  0x97   : > { %v860_v28 = vrot.slane %v851_v23, 1  ;;  %v857_v29 = vrot.slane %v849_v24, 1  ;;  %v377_v23 = vstv %s2957_s26  ;;  %s2395_s26 = sld [smem:[#allocation6 + $0x208]] }
  0x99   : > { %586 = vrot.lane.b32.xlu1 %v578_v25, %s2621_s11  ;;  %584 = vrot.lane.b32.xlu0 %v579_v30, %s2621_s11  ;;  %v830_v25 = vsel %vm294_vm0, %v827_v15, %v829_v20  ;;  %v852_v30 = vmul.f32 %v848_v18, %v2769_v3  ;;  %v861_v36 = vsel %vm294_vm0, %v858_v27, %v860_v28 }
  0x9a   : > { %v859_v37 = vsel %vm294_vm0, %v857_v29, %v858_v27 }
  0x9b   : > { %v862_v38 = vrot.slane %v852_v30, 1 }
  0x9d   : > { %615 = vrot.lane.b32.xlu1 %v610_v33, %s2622_s19  ;;  %613 = vrot.lane.b32.xlu0 %v608_v35, %s2622_s19  ;;  %v908_v33 = vmul.f32 %v906_v26, %v2772_v4  ;;  %v907_v35 = vmul.f32 %v906_v26, %v2766_v1  ;;  %v863_v44 = vsel %vm294_vm0, %v860_v28, %v862_v38 }
  0x9f   : > { %v916_v41 = vrot.slane %v908_v33, 2  ;;  %v915_v43 = vrot.slane %v907_v35, 2  ;;  %v989_v33 = vstv %s2374_s18  ;;  %s2359_s18 = sld [smem:[#allocation6 + $0x100]] }
  0xa1   : > { %619 = vrot.lane.b32.xlu1 %v611_v34, %s2622_s19  ;;  %617 = vrot.lane.b32.xlu0 %v612_v39, %s2622_s19  ;;  %v909_v34 = vmul.f32 %v906_v26, %v2763_v0  ;;  %v917_v51 = vsel %vm386_vm1, %v915_v43, %v916_v41 }
  0xa3   : > { %v918_v42 = vrot.slane %v909_v34, 2 }
  0xa5   : > { %673 = vrot.lane.b32.xlu1 %v668_v47, %s2621_s11  ;;  %671 = vrot.lane.b32.xlu0 %v666_v48, %s2621_s11  ;;  %v939_v48 = vstv %s2367_s9  ;;  %v919_v50 = vsel %vm386_vm1, %v916_v41, %v918_v42  ;;  %s3127_s9 = sld [smem:[#allocation6 + $0x202]] }
  0xa6   : > { %v941_v53 = vmul.f32 %v939_v48, %v2772_v4  ;;  %v942_v54 = vmul.f32 %v939_v48, %v2763_v0  ;;  %v940_v55 = vmul.f32 %v939_v48, %v2766_v1 }
  0xa8   : > { %v951_v5 = vrot.slane %v942_v54, 2  ;;  %v948_v6 = vrot.slane %v940_v55, 2  ;;  %v381_v54 = vmul.f32 %v377_v23, %v2769_v3 }
  0xa9   : > { %677 = vrot.lane.b32.xlu1 %v669_v49, %s2621_s11  ;;  %675 = vrot.lane.b32.xlu0 %v670_v52, %s2621_s11  ;;  %v223_v49 = vstv %s222_s10  ;;  %v920_v52 = vrot.slane %v910_v45, 2  ;;  %v990_v45 = vmul.f32 %v989_v33, %v2766_v1  ;;  %s3140_s10 = sld [smem:[#allocation6 + $0x204]] }
  0xaa   : > { %v225_v60 = vmul.f32 %v223_v49, %v2772_v4  ;;  %v226_v9 = vmul.f32 %v223_v49, %v2763_v0 }
  0xad   : > { %706 = vrot.lane.b32.xlu1 %v701_v56, %s2622_s19  ;;  %704 = vrot.lane.b32.xlu0 %v699_v57, %s2622_s19 }
  0xb1   : > { %710 = vrot.lane.b32.xlu1 %v702_v58, %s2622_s19  ;;  %708 = vrot.lane.b32.xlu0 %v703_v59, %s2622_s19  ;;  %v221_v58 = vstv %s220_s22  ;;  %v224_v59 = vmul.f32 %v223_v49, %v2766_v1  ;;  %s3180_s22 = sld [smem:[#allocation6 + $0x205]] }
  0xb2   : > { %v229_v15 = vadd.f32 %v225_v60, %v221_v58  ;;  %v230_v24 = vadd.f32 %v226_v9, %v221_v58 }
  0xb5   : > { %749 = vrot.lane.b32.xlu1 %v740_v61, %s2621_s11  ;;  %747 = vrot.lane.b32.xlu0 %v739_v62, %s2621_s11  ;;  %v285_v61 = vstv %s2338_s21  ;;  %v943_v62 = vmul.f32 %v939_v48, %v2769_v3  ;;  %s3199_s21 = sld [smem:[#allocation6 + $0x207]] }
  0xb6   : > { %v287_v10 = vmul.f32 %v285_v61, %v2772_v4  ;;  %v288_v11 = vmul.f32 %v285_v61, %v2763_v0  ;;  %v286_v14 = vmul.f32 %v285_v61, %v2766_v1  ;;  %v289_v27 = vmul.f32 %v285_v61, %v2769_v3 }
  0xb7   : > { %v953_v18 = vrot.slane %v943_v62, 2  ;;  %v992_v61 = vmul.f32 %v989_v33, %v2763_v0 }
  0xb8   : > { %v298_v22 = vrot.slane %v288_v11, 1  ;;  %v295_v26 = vrot.slane %v286_v14, 1  ;;  %v300_v43 = vrot.slane %v289_v27, 1 }
  0xb9   : > { %753 = vrot.lane.b32.xlu1 %v742_v63, %s2621_s11  ;;  %751 = vrot.lane.b32.xlu0 %v741_v2, %s2621_s11  ;;  %v921_v63 = vsel %vm386_vm1, %v918_v42, %v920_v52  ;;  %v949_v2 = vrot.slane %v941_v53, 2  ;;  %v954_v30 = vsel %vm386_vm1, %v951_v5, %v953_v18 }
  0xbb   : > { %v952_v16 = vsel %vm386_vm1, %v949_v2, %v951_v5  ;;  %v950_v17 = vsel %vm386_vm1, %v948_v6, %v949_v2 }
  0xbd   : > { %775 = vrot.lane.b32.xlu1 %v766_v7, %s2622_s19  ;;  %773 = vrot.lane.b32.xlu0 %v765_v8, %s2622_s19 }
  0xc1   : > { %779 = vrot.lane.b32.xlu1 %v768_v12, %s2622_s19  ;;  %777 = vrot.lane.b32.xlu0 %v767_v13, %s2622_s19  ;;  %v228_v12 = vadd.f32 %v224_v59, %v221_v58  ;;  %v227_v13 = vmul.f32 %v223_v49, %v2769_v3  ;;  %v1015_v49 = vstv %s2978_s23  ;;  %s2358_s23 = sld [smem:[#allocation7 + $0x2]] }
  0xc2   : > { %v1016_v11 = vmul.f32 %v1015_v49, %v2766_v1 }
  0xc5   : > { %833 = vrot.lane.b32.xlu1 %v828_v19, %s2621_s11  ;;  %831 = vrot.lane.b32.xlu0 %v826_v21, %s2621_s11  ;;  %v296_v21 = vrot.slane %v287_v10, 1  ;;  %v392_v10 = vrot.slane %v381_v54, 2 }
  0xc7   : > { %v2923_v31 = vpop.permute.xlu1 %246  ;;  %v2925_v32 = vpop.permute.xlu0 %242  ;;  %v297_v42 = vsel %vm294_vm0, %v295_v26, %v296_v21 }
  0xc8   : > { %v254_v28 = vadd.f32 %v2925_v32, %v228_v12  ;;  %v256_v48 = vadd.f32 %v2923_v31, %v230_v24  ;;  %v301_v31 = vsel %vm294_vm0, %v298_v22, %v300_v43  ;;  %v1019_v24 = vmul.f32 %v1015_v49, %v2769_v3 }
  0xc9   : > { %837 = vrot.lane.b32.xlu1 %v829_v20, %s2621_s11  ;;  %835 = vrot.lane.b32.xlu0 %v830_v25, %s2621_s11  ;;  %v231_v25 = vadd.f32 %v227_v13, %v221_v58 }
  0xcb   : > { %v2934_v39 = vpop.permute.xlu1 %248  ;;  %v2936_v40 = vpop.permute.xlu0 %244 }
  0xcc   : > { %v255_v29 = vadd.f32 %v2936_v40, %v229_v15  ;;  %v299_v40 = vsel %vm294_vm0, %v296_v21, %v298_v22 }
  0xcd   : > { %866 = vrot.lane.b32.xlu1 %v861_v36, %s2622_s19  ;;  %864 = vrot.lane.b32.xlu0 %v859_v37, %s2622_s19  ;;  %v379_v36 = vmul.f32 %v377_v23, %v2772_v4  ;;  %v380_v37 = vmul.f32 %v377_v23, %v2763_v0 }
  0xcf   : > { %v2942_v46 = vpop.permute.xlu1 %270  ;;  %v2944_v47 = vpop.permute.xlu0 %268 }
  0xd0   : > { %v281_v41 = vadd.f32 %v2942_v46, %v255_v29  ;;  %v280_v32 = vadd.f32 %v2944_v47, %v254_v28  ;;  %v257_v46 = vadd.f32 %v2934_v39, %v231_v25  ;;  %v993_v39 = vmul.f32 %v989_v33, %v2769_v3 }
  0xd1   : > { %870 = vrot.lane.b32.xlu1 %v862_v38, %s2622_s19  ;;  %868 = vrot.lane.b32.xlu0 %v863_v44, %s2622_s19  ;;  %v378_v38 = vmul.f32 %v377_v23, %v2766_v1  ;;  %v991_v44 = vmul.f32 %v989_v33, %v2772_v4  ;;  %v1018_v25 = vmul.f32 %v1015_v49, %v2763_v0 }
  0xd2   : > { %v307_v59 = vadd.f32 %v299_v40, %v281_v41  ;;  %v306_v60 = vadd.f32 %v297_v42, %v280_v32 }
  0xd3   : > { %v2953_v56 = vpop.permute.xlu1 %274  ;;  %v2955_v57 = vpop.permute.xlu0 %272  ;;  %v387_v53 = vrot.slane %v378_v38, 2 }
  0xd4   : > { %v283_v55 = vadd.f32 %v2953_v56, %v257_v46  ;;  %v282_v58 = vadd.f32 %v2955_v57, %v256_v48  ;;  %v1017_v57 = vmul.f32 %v1015_v49, %v2772_v4 }
  0xd5   : > { %924 = vrot.lane.b32.xlu1 %v919_v50, %s2621_s11  ;;  %922 = vrot.lane.b32.xlu0 %v917_v51, %s2621_s11  ;;  %v388_v51 = vrot.slane %v379_v36, 2  ;;  %v1099_v36 = vstv %s3020_s24  ;;  %s2365_s24 = sld [smem:[#allocation6 + $0x106]] }
  0xd6   : > { %v309_v12 = vadd.f32 %v300_v43, %v283_v55  ;;  %v308_v13 = vadd.f32 %v301_v31, %v282_v58  ;;  %v1101_v48 = vmul.f32 %v1099_v36, %v2772_v4  ;;  %v1103_v58 = vmul.f32 %v1099_v36, %v2769_v3 }
  0xd7   : > { %v2965_v7 = vpop.permute.xlu1 %329  ;;  %v2967_v8 = vpop.permute.xlu0 %327  ;;  %v389_v6 = vsel %vm386_vm1, %v387_v53, %v388_v51 }
  0xd8   : > { %v340_v62 = vadd.f32 %v2965_v7, %v307_v59  ;;  %v339_v56 = vadd.f32 %v2967_v8, %v306_v60  ;;  %v1109_v59 = vrot.slane %v1101_v48, 1 }
  0xd9   : > { %928 = vrot.lane.b32.xlu1 %v920_v52, %s2621_s11  ;;  %926 = vrot.lane.b32.xlu0 %v921_v63, %s2621_s11  ;;  %v390_v52 = vrot.slane %v380_v37, 2  ;;  %v1066_v63 = vstv %s2991_s15  ;;  %s2362_s15 = sld [smem:[#allocation6 + $0x103]] }
  0xda   : > { %v1068_v8 = vmul.f32 %v1066_v63, %v2772_v4  ;;  %v1069_v15 = vmul.f32 %v1066_v63, %v2763_v0  ;;  %v1070_v33 = vmul.f32 %v1066_v63, %v2769_v3 }
  0xdb   : > { %v2980_v19 = vpop.permute.xlu1 %333  ;;  %v2982_v20 = vpop.permute.xlu0 %331  ;;  %v391_v2 = vsel %vm386_vm1, %v388_v51, %v390_v52  ;;  %v393_v22 = vsel %vm386_vm1, %v390_v52, %v392_v10 }
  0xdd   : > { %957 = vrot.lane.b32.xlu1 %v952_v16, %s2622_s19  ;;  %955 = vrot.lane.b32.xlu0 %v950_v17, %s2622_s19  ;;  %v1067_v16 = vmul.f32 %v1066_v63, %v2766_v1  ;;  %v342_v17 = vadd.f32 %v2980_v19, %v309_v12  ;;  %v1076_v19 = vrot.slane %v1068_v8, 1 }
  0xdf   : > { %v363_v34 = vpop.permute.xlu1 %362  ;;  %v361_v35 = vpop.permute.xlu0 %360 }
  0xe0   : > { %v373_v14 = vadd.f32 %v363_v34, %v340_v62  ;;  %v372_v7 = vadd.f32 %v361_v35, %v339_v56 }
  0xe1   : > { %961 = vrot.lane.b32.xlu1 %v953_v18, %s2622_s19  ;;  %959 = vrot.lane.b32.xlu0 %v954_v30, %s2622_s19  ;;  %v341_v18 = vadd.f32 %v2982_v20, %v308_v13  ;;  %v1078_v20 = vrot.slane %v1069_v15, 1  ;;  %v1075_v30 = vrot.slane %v1067_v16, 1  ;;  %v1190_v16 = vstv %s2381_s30  ;;  %s3336_s30 = sld [smem:[#allocation6 + $0x287]] }
  0xe2   : > { %v399_v28 = vadd.f32 %v391_v2, %v373_v14  ;;  %v398_v29 = vadd.f32 %v389_v6, %v372_v7 }
  0xe3   : > { %v367_v47 = vpop.permute.xlu1 %366  ;;  %v365_v50 = vpop.permute.xlu0 %364  ;;  %v1079_v43 = vsel %vm294_vm0, %v1076_v19, %v1078_v20 }
  0xe4   : > { %v375_v26 = vadd.f32 %v367_v47, %v342_v17  ;;  %v374_v27 = vadd.f32 %v365_v50, %v341_v18  ;;  %v1102_v47 = vmul.f32 %v1099_v36, %v2763_v0  ;;  %v1100_v50 = vmul.f32 %v1099_v36, %v2766_v1 }
  0xe5   : > { %1000 = vrot.lane.b32.xlu1 %v991_v44, %s2621_s11  ;;  %998 = vrot.lane.b32.xlu0 %v990_v45, %s2621_s11  ;;  %v1077_v44 = vsel %vm294_vm0, %v1075_v30, %v1076_v19  ;;  %v1080_v45 = vrot.slane %v1070_v33, 1  ;;  %v477_v17 = vstv %s2345_s4  ;;  %v1194_v36 = vmul.f32 %v1190_v16, %v2769_v3  ;;  %s2409_s4 = sld [smem:[#allocation6 + $0x288]] }
  0xe6   : > { %v401_v41 = vadd.f32 %v392_v10, %v375_v26  ;;  %v400_v32 = vadd.f32 %v393_v22, %v374_v27  ;;  %v1111_v60 = vrot.slane %v1102_v47, 1  ;;  %v1108_v31 = vrot.slane %v1100_v50, 1 }
  0xe7   : > { %v422_v5 = vpop.permute.xlu1 %421  ;;  %v420_v9 = vpop.permute.xlu0 %419  ;;  %v1081_v55 = vsel %vm294_vm0, %v1078_v20, %v1080_v45  ;;  %v478_v19 = vmul.f32 %v477_v17, %v2766_v1  ;;  %v539_v20 = vstv %s2348_s6  ;;  %s2372_s6 = sld [smem:[#allocation7 + $0x3]] }
  0xe8   : > { %v432_v34 = vadd.f32 %v422_v5, %v399_v28  ;;  %v431_v35 = vadd.f32 %v420_v9, %v398_v29  ;;  %v1112_v63 = vsel %vm294_vm0, %v1109_v59, %v1111_v60  ;;  %v1110_v2 = vsel %vm294_vm0, %v1108_v31, %v1109_v59 }
  0xe9   : > { %1004 = vrot.lane.b32.xlu1 %v993_v39, %s2621_s11  ;;  %1002 = vrot.lane.b32.xlu0 %v992_v61, %s2621_s11  ;;  %v1157_v39 = vstv %s3045_s27  ;;  %v1113_v5 = vrot.slane %v1103_v58, 1  ;;  %v475_v28 = vstv %s2344_s5  ;;  %v479_v29 = vmul.f32 %v477_v17, %v2772_v4  ;;  %s3280_s27 = sld [smem:[#allocation6 + $0x282]] }
  0xea   : > { %v1159_v56 = vmul.f32 %v1157_v39, %v2772_v4  ;;  %v1158_v6 = vmul.f32 %v1157_v39, %v2766_v1  ;;  %v1161_v13 = vmul.f32 %v1157_v39, %v2769_v3  ;;  %v543_v59 = vmul.f32 %v539_v20, %v2769_v3  ;;  %s2373_s5 = sld [smem:[#allocation6 + $0x180]] }
  0xeb   : > { %v426_v21 = vpop.permute.xlu1 %425  ;;  %v424_v23 = vpop.permute.xlu0 %423  ;;  %v1114_v14 = vsel %vm294_vm0, %v1111_v60, %v1113_v5 }
  0xec   : > { %v434_v46 = vadd.f32 %v426_v21, %v401_v41  ;;  %v433_v49 = vadd.f32 %v424_v23, %v400_v32  ;;  %v1166_v7 = vrot.slane %v1158_v6, 2  ;;  %v1171_v21 = vrot.slane %v1161_v13, 2 }
  0xed   : > { %1026 = vrot.lane.b32.xlu1 %v1017_v57, %s2622_s19  ;;  %1024 = vrot.lane.b32.xlu0 %v1016_v11, %s2622_s19  ;;  %v1160_v57 = vmul.f32 %v1157_v39, %v2763_v0  ;;  %v1167_v11 = vrot.slane %v1159_v56, 2  ;;  %v1192_v23 = vmul.f32 %v1190_v16, %v2772_v4  ;;  %v481_v41 = vmul.f32 %v477_v17, %v2769_v3 }
  0xee   : > { %v541_v32 = vmul.f32 %v539_v20, %v2772_v4  ;;  %v1240_v56 = vstv %s2388_s8  ;;  %s2379_s8 = sld [smem:[#allocation6 + $0x186]] }
  0xef   : > { %v455_v37 = vpop.permute.xlu1 %454  ;;  %v453_v38 = vpop.permute.xlu0 %452  ;;  %v1169_v12 = vrot.slane %v1160_v57, 2  ;;  %v1168_v22 = vsel %vm386_vm1, %v1166_v7, %v1167_v11  ;;  %v1200_v33 = vrot.slane %v1192_v23, 2  ;;  %v1242_v13 = vmul.f32 %v1240_v56, %v2772_v4 }
  0xf0   : > { %v465_v40 = vadd.f32 %v455_v37, %v432_v34  ;;  %v464_v42 = vadd.f32 %v453_v38, %v431_v35 }
  0xf1   : > { %1030 = vrot.lane.b32.xlu1 %v1019_v24, %s2622_s19  ;;  %1028 = vrot.lane.b32.xlu0 %v1018_v25, %s2622_s19  ;;  %v1170_v18 = vsel %vm386_vm1, %v1167_v11, %v1169_v12  ;;  %v1193_v24 = vmul.f32 %v1190_v16, %v2763_v0  ;;  %v1191_v25 = vmul.f32 %v1190_v16, %v2766_v1 }
  0xf2   : > { %470 = vst.msk [vmem:[%s3050_s16 + $0x8] sm:$0xff] %vm468_vm2, %v465_v40  ;;  %469 = vst.msk [vmem:[%s3050_s16] sm:$0xff] %vm468_vm2, %v464_v42  ;;  %v1172_v30 = vsel %vm386_vm1, %v1169_v12, %v1171_v21  ;;  %v542_v40 = vmul.f32 %v539_v20, %v2763_v0  ;;  %v483_v42 = vadd.f32 %v479_v29, %v475_v28  ;;  %v553_v12 = vrot.slane %v543_v59, 1  ;;  %v3170_v29 = vld [vmem:[%s2748_s12 + $0x10] sm:$0xff] }
  0xf3   : > { %v459_v51 = vpop.permute.xlu1 %458  ;;  %v457_v52 = vpop.permute.xlu0 %456  ;;  %v1202_v34 = vrot.slane %v1193_v24, 2  ;;  %v1199_v35 = vrot.slane %v1191_v25, 2 }
  0xf4   : > { %v467_v53 = vadd.f32 %v459_v51, %v434_v46  ;;  %v466_v54 = vadd.f32 %v457_v52, %v433_v49  ;;  %v1204_v49 = vrot.slane %v1194_v36, 2  ;;  %v549_v51 = vrot.slane %v541_v32, 1 }
  0xf5   : > { %1084 = vrot.lane.b32.xlu1 %v1079_v43, %s2621_s11  ;;  %1082 = vrot.lane.b32.xlu0 %v1077_v44, %s2621_s11  ;;  %v480_v43 = vmul.f32 %v477_v17, %v2763_v0  ;;  %v540_v44 = vmul.f32 %v539_v20, %v2766_v1  ;;  %v1203_v48 = vsel %vm386_vm1, %v1200_v33, %v1202_v34  ;;  %v551_v52 = vrot.slane %v542_v40, 1 }
  0xf6   : > { %473 = vst.msk [vmem:[%s3050_s16 + $0x18] sm:$0x3f] %vm472_vm3, %v467_v53  ;;  %v1201_v46 = vsel %vm386_vm1, %v1199_v35, %v1200_v33  ;;  %v630_v53 = vstv %s3106_s7  ;;  %v1205_v39 = vsel %vm386_vm1, %v1202_v34, %v1204_v49  ;;  %v1317_v33 = vstv %s3140_s10  ;;  %s2376_s7 = sld [smem:[#allocation6 + $0x183]] }
  0xf7   : > { %471 = vst.msk [vmem:[%s3050_s16 + $0x10] sm:$0xff] %vm468_vm2, %v466_v54  ;;  %v3072_v61 = vpop.permute.xlu1 %498  ;;  %v3074_v62 = vpop.permute.xlu0 %496  ;;  %v485_v54 = vadd.f32 %v481_v41, %v475_v28  ;;  %v548_v58 = vrot.slane %v540_v44, 1  ;;  %v633_v3 = vmul.f32 %v630_v53, %v2763_v0  ;;  %s3417_s10 = sld [smem:[#allocation6 + $0x302]] }
  0xf8   : > { %v509_v60 = vadd.f32 %v3072_v61, %v483_v42 }
  0xf9   : > { %1088 = vrot.lane.b32.xlu1 %v1080_v45, %s2621_s11  ;;  %1086 = vrot.lane.b32.xlu0 %v1081_v55, %s2621_s11  ;;  %v482_v45 = vadd.f32 %v478_v19, %v475_v28  ;;  %v484_v55 = vadd.f32 %v480_v43, %v475_v28  ;;  %v550_v11 = vsel %vm294_vm0, %v548_v58, %v549_v51 }
  0xfa   : > { %v1243_v19 = vmul.f32 %v3170_v29, %v1240_v56 }
  0xfb   : > { %v3083_v9 = vpop.permute.xlu1 %502  ;;  %v3085_v10 = vpop.permute.xlu0 %500  ;;  %v508_v31 = vadd.f32 %v3074_v62, %v482_v45  ;;  %v552_v62 = vsel %vm294_vm0, %v549_v51, %v551_v52  ;;  %v1320_v45 = vmul.f32 %v3170_v29, %v1317_v33 }
  0xfc   : > { %v510_v7 = vadd.f32 %v3085_v10, %v484_v55  ;;  %v554_v10 = vsel %vm294_vm0, %v551_v52, %v553_v12 }
  0xfd   : > { %1117 = vrot.lane.b32.xlu1 %v1112_v63, %s2622_s19  ;;  %1115 = vrot.lane.b32.xlu0 %v1110_v2, %s2622_s19  ;;  %v632_v2 = vmul.f32 %v630_v53, %v2772_v4 }
  0xff   : > { %v3091_v8 = vpop.permute.xlu1 %524  ;;  %v3093_v15 = vpop.permute.xlu0 %522  ;;  %v640_v17 = vrot.slane %v632_v2, 2  ;;  %v1350_v2 = vstv %s3180_s22  ;;  %s3428_s22 = sld [smem:[#allocation6 + $0x304]] }
 0x100   : > { %v535_v6 = vadd.f32 %v3091_v8, %v509_v60  ;;  %v534_v61 = vadd.f32 %v3093_v15, %v508_v31  ;;  %v1266_v8 = vstv %s3127_s9  ;;  %s3398_s9 = sld [smem:[#allocation6 + $0x301]] }
 0x101   : > { %1121 = vrot.lane.b32.xlu1 %v1113_v5, %s2622_s19  ;;  %1119 = vrot.lane.b32.xlu0 %v1114_v14, %s2622_s19  ;;  %v631_v5 = vmul.f32 %v630_v53, %v2766_v1  ;;  %v3153_v14 = vld [vmem:[%s2748_s12] sm:$0xff]  ;;  %v511_v1 = vadd.f32 %v3083_v9, %v485_v54  ;;  %v1269_v55 = vmul.f32 %v3170_v29, %v1266_v8 }
 0x102   : > { %v1241_v0 = vmul.f32 %v3153_v14, %v1240_v56  ;;  %v560_v9 = vadd.f32 %v552_v62, %v535_v6  ;;  %v559_v25 = vadd.f32 %v550_v11, %v534_v61  ;;  %v1267_v40 = vmul.f32 %v3153_v14, %v1266_v8 }
 0x103   : > { %v3102_v26 = vpop.permute.xlu1 %528  ;;  %v3104_v27 = vpop.permute.xlu0 %526 }
 0x104   : > { %v537_v23 = vadd.f32 %v3102_v26, %v511_v1  ;;  %v536_v24 = vadd.f32 %v3104_v27, %v510_v7 }
 0x105   : > { %1175 = vrot.lane.b32.xlu1 %v1170_v18, %s2621_s11  ;;  %1173 = vrot.lane.b32.xlu0 %v1168_v22, %s2621_s11  ;;  %v642_v18 = vrot.slane %v633_v3, 2  ;;  %v3160_v22 = vld [vmem:[%s2748_s12 + $0x18] sm:$0xff] }
 0x106   : > { %v634_v4 = vmul.f32 %v3160_v22, %v630_v53  ;;  %v1244_v28 = vmul.f32 %v3160_v22, %v1240_v56  ;;  %v562_v42 = vadd.f32 %v553_v12, %v537_v23  ;;  %v1270_v54 = vmul.f32 %v3160_v22, %v1266_v8 }
 0x107   : > { %v3114_v37 = vpop.permute.xlu1 %582  ;;  %v3116_v38 = vpop.permute.xlu0 %580  ;;  %v643_v34 = vsel %vm386_vm1, %v640_v17, %v642_v18  ;;  %v1321_v56 = vmul.f32 %v3160_v22, %v1317_v33 }
 0x108   : > { %v593_v20 = vadd.f32 %v3114_v37, %v560_v9  ;;  %v592_v26 = vadd.f32 %v3116_v38, %v559_v25  ;;  %v644_v32 = vrot.slane %v634_v4, 2  ;;  %v561_v37 = vadd.f32 %v554_v10, %v536_v24 }
 0x109   : > { %1179 = vrot.lane.b32.xlu1 %v1171_v21, %s2621_s11  ;;  %1177 = vrot.lane.b32.xlu0 %v1172_v30, %s2621_s11  ;;  %v639_v21 = vrot.slane %v631_v5, 2  ;;  %v3176_v30 = vld [vmem:[%s2748_s12 + $0x8] sm:$0xff]  ;;  %v1354_v10 = vmul.f32 %v3160_v22, %v1350_v2 }
 0x10a   : > { %v1268_v27 = vmul.f32 %v3176_v30, %v1266_v8  ;;  %v1319_v44 = vmul.f32 %v3176_v30, %v1317_v33  ;;  %v645_v52 = vsel %vm386_vm1, %v642_v18, %v644_v32  ;;  %v1352_v1 = vmul.f32 %v3176_v30, %v1350_v2 }
 0x10b   : > { %v3129_v47 = vpop.permute.xlu1 %586  ;;  %v3131_v50 = vpop.permute.xlu0 %584  ;;  %v641_v36 = vsel %vm386_vm1, %v639_v21, %v640_v17 }
 0x10c   : > { %v1360_v24 = vrot.slane %v1352_v1, 1 }
 0x10d   : > { %1208 = vrot.lane.b32.xlu1 %v1203_v48, %s2622_s19  ;;  %1206 = vrot.lane.b32.xlu0 %v1201_v46, %s2622_s19  ;;  %v1318_v48 = vmul.f32 %v3153_v14, %v1317_v33  ;;  %v595_v46 = vadd.f32 %v3129_v47, %v562_v42  ;;  %v1327_v47 = vrot.slane %v1319_v44, 1 }
 0x10f   : > { %v616_v57 = vpop.permute.xlu1 %615  ;;  %v614_v63 = vpop.permute.xlu0 %613 }
 0x110   : > { %v626_v43 = vadd.f32 %v616_v57, %v593_v20  ;;  %v625_v38 = vadd.f32 %v614_v63, %v592_v26 }
 0x111   : > { %1212 = vrot.lane.b32.xlu1 %v1204_v49, %s2622_s19  ;;  %1210 = vrot.lane.b32.xlu0 %v1205_v39, %s2622_s19  ;;  %v594_v49 = vadd.f32 %v3131_v50, %v561_v37  ;;  %v1329_v39 = vrot.slane %v1320_v45, 1  ;;  %v1326_v50 = vrot.slane %v1318_v48, 1  ;;  %v1441_v48 = vstv %s2395_s26  ;;  %s2431_s26 = sld [smem:[#allocation6 + $0x382]] }
 0x112   : > { %v651_v60 = vadd.f32 %v643_v34, %v626_v43  ;;  %v650_v31 = vadd.f32 %v641_v36, %v625_v38 }
 0x113   : > { %v620_v15 = vpop.permute.xlu1 %619  ;;  %v618_v16 = vpop.permute.xlu0 %617  ;;  %v1330_v12 = vsel %vm294_vm0, %v1327_v47, %v1329_v39 }
 0x114   : > { %v628_v58 = vadd.f32 %v620_v15, %v595_v46  ;;  %v627_v59 = vadd.f32 %v618_v16, %v594_v49  ;;  %v1353_v15 = vmul.f32 %v3170_v29, %v1350_v2  ;;  %v1351_v16 = vmul.f32 %v3153_v14, %v1350_v2 }
 0x115   : > { %1251 = vrot.lane.b32.xlu1 %v1242_v13, %s2621_s11  ;;  %1249 = vrot.lane.b32.xlu0 %v1241_v0, %s2621_s11  ;;  %v1328_v13 = vsel %vm294_vm0, %v1326_v50, %v1327_v47  ;;  %v1331_v0 = vrot.slane %v1321_v56, 1  ;;  %v728_v46 = vstv %s2359_s18  ;;  %v1445_v2 = vmul.f32 %v3160_v22, %v1441_v48  ;;  %s2433_s18 = sld [smem:[#allocation6 + $0x384]] }
 0x116   : > { %v653_v6 = vadd.f32 %v644_v32, %v628_v58  ;;  %v652_v61 = vadd.f32 %v645_v52, %v627_v59  ;;  %v1362_v9 = vrot.slane %v1353_v15, 1  ;;  %v1359_v25 = vrot.slane %v1351_v16, 1 }
 0x117   : > { %v674_v35 = vpop.permute.xlu1 %673  ;;  %v672_v41 = vpop.permute.xlu0 %671  ;;  %v1332_v23 = vsel %vm294_vm0, %v1329_v39, %v1331_v0  ;;  %v729_v47 = vmul.f32 %v3153_v14, %v728_v46  ;;  %v790_v39 = vstv %s2362_s15  ;;  %v881_v15 = vstv %s2365_s24  ;;  %s2390_s15 = sld [smem:[#allocation6 + $0x203]] }
 0x118   : > { %v684_v57 = vadd.f32 %v674_v35, %v651_v60  ;;  %v683_v63 = vadd.f32 %v672_v41, %v650_v31  ;;  %v1363_v33 = vsel %vm294_vm0, %v1360_v24, %v1362_v9  ;;  %v1361_v34 = vsel %vm294_vm0, %v1359_v25, %v1360_v24  ;;  %s2386_s24 = sld [smem:[#allocation7 + $0x4]] }
 0x119   : > { %1255 = vrot.lane.b32.xlu1 %v1244_v28, %s2621_s11  ;;  %1253 = vrot.lane.b32.xlu0 %v1243_v19, %s2621_s11  ;;  %v1408_v28 = vstv %s3199_s21  ;;  %v1364_v35 = vrot.slane %v1354_v10, 1  ;;  %v730_v60 = vmul.f32 %v3176_v30, %v728_v46  ;;  %v726_v31 = vstv %s2358_s23  ;;  %s3464_s21 = sld [smem:[#allocation6 + $0x381]] }
 0x11a   : > { %v1410_v26 = vmul.f32 %v3176_v30, %v1408_v28  ;;  %v1409_v36 = vmul.f32 %v3153_v14, %v1408_v28  ;;  %v1412_v37 = vmul.f32 %v3160_v22, %v1408_v28  ;;  %v883_v25 = vmul.f32 %v3176_v30, %v881_v15  ;;  %s2387_s23 = sld [smem:[#allocation6 + $0x200]] }
 0x11b   : > { %v678_v51 = vpop.permute.xlu1 %677  ;;  %v676_v53 = vpop.permute.xlu0 %675  ;;  %v1365_v43 = vsel %vm294_vm0, %v1362_v9, %v1364_v35  ;;  %v794_v9 = vmul.f32 %v3160_v22, %v790_v39  ;;  %v884_v10 = vmul.f32 %v3170_v29, %v881_v15 }
 0x11c   : > { %v686_v7 = vadd.f32 %v678_v51, %v653_v6  ;;  %v685_v8 = vadd.f32 %v676_v53, %v652_v61  ;;  %v1417_v38 = vrot.slane %v1409_v36, 2  ;;  %v1422_v51 = vrot.slane %v1412_v37, 2 }
 0x11d   : > { %1277 = vrot.lane.b32.xlu1 %v1268_v27, %s2622_s19  ;;  %1275 = vrot.lane.b32.xlu0 %v1267_v40, %s2622_s19  ;;  %v1411_v27 = vmul.f32 %v3170_v29, %v1408_v28  ;;  %v1418_v40 = vrot.slane %v1410_v26, 2  ;;  %v1443_v53 = vmul.f32 %v3176_v30, %v1441_v48  ;;  %v732_v6 = vmul.f32 %v3160_v22, %v728_v46 }
 0x11e   : > { %v731_v61 = vmul.f32 %v3170_v29, %v728_v46  ;;  %v882_v36 = vmul.f32 %v3153_v14, %v881_v15  ;;  %v891_v46 = vrot.slane %v883_v25, 2 }
 0x11f   : > { %v707_v3 = vpop.permute.xlu1 %706  ;;  %v705_v5 = vpop.permute.xlu0 %704  ;;  %v1420_v42 = vrot.slane %v1411_v27, 2  ;;  %v1419_v52 = vsel %vm386_vm1, %v1417_v38, %v1418_v40  ;;  %v1451_v56 = vrot.slane %v1443_v53, 2  ;;  %v885_v53 = vmul.f32 %v3160_v22, %v881_v15 }
 0x120   : > { %v717_v62 = vadd.f32 %v707_v3, %v684_v57  ;;  %v716_v11 = vadd.f32 %v705_v5, %v683_v63 }
 0x121   : > { %1281 = vrot.lane.b32.xlu1 %v1270_v54, %s2622_s19  ;;  %1279 = vrot.lane.b32.xlu0 %v1269_v55, %s2622_s19  ;;  %v1421_v49 = vsel %vm386_vm1, %v1418_v40, %v1420_v42  ;;  %v1444_v54 = vmul.f32 %v3170_v29, %v1441_v48  ;;  %v1442_v55 = vmul.f32 %v3153_v14, %v1441_v48 }
 0x122   : > { %2355 = vst.msk [vmem:[%s3050_s16 + $0x28] sm:$0xff] %vm468_vm2, %v717_v62  ;;  %2354 = vst.msk [vmem:[%s3050_s16 + $0x20] sm:$0xff] %vm468_vm2, %v716_v11  ;;  %v1423_v50 = vsel %vm386_vm1, %v1420_v42, %v1422_v51  ;;  %v792_v62 = vmul.f32 %v3176_v30, %v790_v39  ;;  %v793_v11 = vmul.f32 %v3170_v29, %v790_v39 }
 0x123   : > { %v711_v17 = vpop.permute.xlu1 %710  ;;  %v709_v18 = vpop.permute.xlu0 %708  ;;  %v1453_v57 = vrot.slane %v1444_v54, 2  ;;  %v1450_v63 = vrot.slane %v1442_v55, 2  ;;  %v1517_v54 = vstv %s3280_s27  ;;  %s3518_s27 = sld [smem:[#allocation6 + $0x206]] }
 0x124   : > { %v719_v21 = vadd.f32 %v711_v17, %v686_v7  ;;  %v718_v4 = vadd.f32 %v709_v18, %v685_v8  ;;  %v1455_v8 = vrot.slane %v1445_v2, 2  ;;  %v736_v18 = vadd.f32 %v732_v6, %v726_v31 }
 0x125   : > { %1335 = vrot.lane.b32.xlu1 %v1330_v12, %s2621_s11  ;;  %1333 = vrot.lane.b32.xlu0 %v1328_v13, %s2621_s11  ;;  %v734_v12 = vadd.f32 %v730_v60, %v726_v31  ;;  %v733_v13 = vadd.f32 %v729_v47, %v726_v31  ;;  %v1454_v1 = vsel %vm386_vm1, %v1451_v56, %v1453_v57  ;;  %v895_v6 = vrot.slane %v885_v53, 2 }
 0x126   : > { %2357 = vst.msk [vmem:[%s3050_s16 + $0x38] sm:$0x3f] %vm472_vm3, %v719_v21  ;;  %v1452_v7 = vsel %vm386_vm1, %v1450_v63, %v1451_v56  ;;  %v735_v21 = vadd.f32 %v731_v61, %v726_v31  ;;  %v1456_v27 = vsel %vm386_vm1, %v1453_v57, %v1455_v8  ;;  %v1568_v57 = vstv %s3291_s29  ;;  %s3528_s29 = sld [smem:[#allocation6 + $0x385]] }
 0x127   : > { %2356 = vst.msk [vmem:[%s3050_s16 + $0x30] sm:$0xff] %vm468_vm2, %v718_v4  ;;  %v3221_v19 = vpop.permute.xlu1 %749  ;;  %v3223_v20 = vpop.permute.xlu0 %747  ;;  %v800_v4 = vrot.slane %v792_v62, 1  ;;  %v1519_v61 = vmul.f32 %v3176_v30, %v1517_v54  ;;  %v1518_v62 = vmul.f32 %v3153_v14, %v1517_v54 }
 0x128   : > { %v760_v28 = vadd.f32 %v3221_v19, %v734_v12  ;;  %v759_v26 = vadd.f32 %v3223_v20, %v733_v13 }
 0x129   : > { %1339 = vrot.lane.b32.xlu1 %v1331_v0, %s2621_s11  ;;  %1337 = vrot.lane.b32.xlu0 %v1332_v23, %s2621_s11  ;;  %v791_v0 = vmul.f32 %v3153_v14, %v790_v39  ;;  %v802_v23 = vrot.slane %v793_v11, 1 }
 0x12b   : > { %v3232_v41 = vpop.permute.xlu1 %753  ;;  %v3234_v32 = vpop.permute.xlu0 %751  ;;  %v799_v24 = vrot.slane %v791_v0, 1  ;;  %v803_v37 = vsel %vm294_vm0, %v800_v4, %v802_v23  ;;  %v1571_v0 = vmul.f32 %v3170_v29, %v1568_v57 }
 0x12c   : > { %v762_v48 = vadd.f32 %v3232_v41, %v736_v18 }
 0x12d   : > { %1368 = vrot.lane.b32.xlu1 %v1363_v33, %s2622_s19  ;;  %1366 = vrot.lane.b32.xlu0 %v1361_v34, %s2622_s19  ;;  %v1491_v33 = vstv %s3261_s25  ;;  %v801_v19 = vsel %vm294_vm0, %v799_v24, %v800_v4  ;;  %v1521_v4 = vmul.f32 %v3160_v22, %v1517_v54  ;;  %s2420_s25 = sld [smem:[#allocation6 + $0x305]] }
 0x12e   : > { %v1493_v20 = vmul.f32 %v3176_v30, %v1491_v33  ;;  %v1492_v38 = vmul.f32 %v3153_v14, %v1491_v33  ;;  %v1495_v41 = vmul.f32 %v3160_v22, %v1491_v33 }
 0x12f   : > { %v3240_v44 = vpop.permute.xlu1 %775  ;;  %v3242_v45 = vpop.permute.xlu0 %773 }
 0x130   : > { %v786_v40 = vadd.f32 %v3240_v44, %v760_v28  ;;  %v785_v42 = vadd.f32 %v3242_v45, %v759_v26  ;;  %v761_v44 = vadd.f32 %v3234_v32, %v735_v21  ;;  %v893_v45 = vrot.slane %v884_v10, 2 }
 0x131   : > { %1372 = vrot.lane.b32.xlu1 %v1364_v35, %s2622_s19  ;;  %1370 = vrot.lane.b32.xlu0 %v1365_v43, %s2622_s19  ;;  %v804_v43 = vrot.slane %v794_v9, 1  ;;  %v1494_v32 = vmul.f32 %v3170_v29, %v1491_v33  ;;  %v1580_v28 = vrot.slane %v1571_v0, 1  ;;  %v1572_v26 = vmul.f32 %v3160_v22, %v1568_v57 }
 0x132   : > { %v811_v31 = vadd.f32 %v803_v37, %v786_v40  ;;  %v810_v47 = vadd.f32 %v801_v19, %v785_v42  ;;  %v896_v18 = vsel %vm386_vm1, %v893_v45, %v895_v6 }
 0x133   : > { %v3251_v58 = vpop.permute.xlu1 %779  ;;  %v3253_v59 = vpop.permute.xlu0 %777  ;;  %v805_v39 = vsel %vm294_vm0, %v802_v23, %v804_v43  ;;  %v1520_v23 = vmul.f32 %v3170_v29, %v1517_v54 }
 0x134   : > { %v788_v55 = vadd.f32 %v3251_v58, %v762_v48  ;;  %v787_v60 = vadd.f32 %v3253_v59, %v761_v44  ;;  %v894_v58 = vsel %vm386_vm1, %v891_v46, %v893_v45 }
 0x135   : > { %1426 = vrot.lane.b32.xlu1 %v1421_v49, %s2621_s11  ;;  %1424 = vrot.lane.b32.xlu0 %v1419_v52, %s2621_s11  ;;  %v890_v52 = vrot.slane %v882_v36, 2 }
 0x136   : > { %v813_v11 = vadd.f32 %v804_v43, %v788_v55  ;;  %v812_v12 = vadd.f32 %v805_v39, %v787_v60 }
 0x137   : > { %v3263_v3 = vpop.permute.xlu1 %833  ;;  %v3265_v5 = vpop.permute.xlu0 %831  ;;  %v892_v63 = vsel %vm386_vm1, %v890_v52, %v891_v46 }
 0x138   : > { %v843_v56 = vadd.f32 %v3265_v5, %v810_v47  ;;  %v1570_v5 = vmul.f32 %v3176_v30, %v1568_v57 }
 0x139   : > { %1430 = vrot.lane.b32.xlu1 %v1422_v51, %s2621_s11  ;;  %1428 = vrot.lane.b32.xlu0 %v1423_v50, %s2621_s11  ;;  %v844_v50 = vadd.f32 %v3263_v3, %v811_v31 }
 0x13b   : > { %v3276_v16 = vpop.permute.xlu1 %837  ;;  %v3278_v17 = vpop.permute.xlu0 %835 }
 0x13d   : > { %1459 = vrot.lane.b32.xlu1 %v1454_v1, %s2622_s19  ;;  %1457 = vrot.lane.b32.xlu0 %v1452_v7, %s2622_s19  ;;  %v1569_v1 = vmul.f32 %v3153_v14, %v1568_v57  ;;  %v846_v7 = vadd.f32 %v3276_v16, %v813_v11  ;;  %v1578_v16 = vrot.slane %v1570_v5, 1 }
 0x13f   : > { %v867_v34 = vpop.permute.xlu1 %866  ;;  %v865_v35 = vpop.permute.xlu0 %864  ;;  %v1581_v43 = vsel %vm294_vm0, %v1578_v16, %v1580_v28 }
 0x140   : > { %v877_v13 = vadd.f32 %v867_v34, %v844_v50  ;;  %v876_v3 = vadd.f32 %v865_v35, %v843_v56  ;;  %v1601_v34 = vstv %s3317_s28  ;;  %s3584_s28 = sld [smem:[#allocation6 + $0x307]] }
 0x141   : > { %1463 = vrot.lane.b32.xlu1 %v1455_v8, %s2622_s19  ;;  %1461 = vrot.lane.b32.xlu0 %v1456_v27, %s2622_s19  ;;  %v845_v8 = vadd.f32 %v3278_v17, %v812_v12  ;;  %v1577_v17 = vrot.slane %v1569_v1, 1  ;;  %v1603_v48 = vmul.f32 %v3176_v30, %v1601_v34  ;;  %v1604_v45 = vmul.f32 %v3170_v29, %v1601_v34 }
 0x142   : > { %v902_v25 = vadd.f32 %v894_v58, %v877_v13  ;;  %v901_v10 = vadd.f32 %v892_v63, %v876_v3  ;;  %v1605_v39 = vmul.f32 %v3160_v22, %v1601_v34  ;;  %v1692_v1 = vstv %s2409_s4  ;;  %s2437_s4 = sld [smem:[#allocation6 + $0x388]] }
 0x143   : > { %v871_v49 = vpop.permute.xlu1 %870  ;;  %v869_v51 = vpop.permute.xlu0 %868  ;;  %v1611_v60 = vrot.slane %v1603_v48, 1  ;;  %v1613_v31 = vrot.slane %v1604_v45, 1  ;;  %v1132_v45 = vstv %s2379_s8  ;;  %s2415_s8 = sld [smem:[#allocation6 + $0x300]] }
 0x144   : > { %v879_v24 = vadd.f32 %v871_v49, %v846_v7  ;;  %v878_v9 = vadd.f32 %v869_v51, %v845_v8  ;;  %v1602_v49 = vmul.f32 %v3153_v14, %v1601_v34  ;;  %v1615_v63 = vrot.slane %v1605_v39, 1 }
 0x145   : > { %1502 = vrot.lane.b32.xlu1 %v1493_v20, %s2621_s11  ;;  %1500 = vrot.lane.b32.xlu0 %v1492_v38, %s2621_s11  ;;  %v1579_v20 = vsel %vm294_vm0, %v1577_v17, %v1578_v16  ;;  %v1582_v38 = vrot.slane %v1572_v26, 1  ;;  %v1614_v57 = vsel %vm294_vm0, %v1611_v60, %v1613_v31  ;;  %v979_v7 = vstv %s2373_s5  ;;  %s2401_s5 = sld [smem:[#allocation6 + $0x280]] }
 0x146   : > { %v904_v40 = vadd.f32 %v895_v6, %v879_v24  ;;  %v903_v42 = vadd.f32 %v896_v18, %v878_v9  ;;  %v1610_v47 = vrot.slane %v1602_v49, 1  ;;  %v1616_v13 = vsel %vm294_vm0, %v1613_v31, %v1615_v63 }
 0x147   : > { %v925_v59 = vpop.permute.xlu1 %924  ;;  %v923_v2 = vpop.permute.xlu0 %922  ;;  %v1583_v55 = vsel %vm294_vm0, %v1580_v28, %v1582_v38  ;;  %v980_v16 = vmul.f32 %v3153_v14, %v979_v7  ;;  %v1041_v28 = vstv %s2376_s7  ;;  %v1696_v34 = vmul.f32 %v3160_v22, %v1692_v1  ;;  %s2404_s7 = sld [smem:[#allocation6 + $0x283]] }
 0x148   : > { %v935_v27 = vadd.f32 %v925_v59, %v902_v25  ;;  %v934_v33 = vadd.f32 %v923_v2, %v901_v10  ;;  %v1612_v59 = vsel %vm294_vm0, %v1610_v47, %v1611_v60  ;;  %v981_v25 = vmul.f32 %v3176_v30, %v979_v7 }
 0x149   : > { %1506 = vrot.lane.b32.xlu1 %v1495_v41, %s2621_s11  ;;  %1504 = vrot.lane.b32.xlu0 %v1494_v32, %s2621_s11  ;;  %v1659_v41 = vstv %s3336_s30  ;;  %v977_v10 = vstv %s2372_s6  ;;  %v1045_v31 = vmul.f32 %v3160_v22, %v1041_v28  ;;  %v1134_v47 = vmul.f32 %v3176_v30, %v1132_v45  ;;  %s3638_s30 = sld [smem:[#allocation6 + $0x308]] }
 0x14a   : > { %v1661_v56 = vmul.f32 %v3176_v30, %v1659_v41  ;;  %v1662_v58 = vmul.f32 %v3170_v29, %v1659_v41  ;;  %v1660_v2 = vmul.f32 %v3153_v14, %v1659_v41  ;;  %v1663_v12 = vmul.f32 %v3160_v22, %v1659_v41  ;;  %s2400_s6 = sld [smem:[#allocation7 + $0x5]] }
 0x14b   : > { %v929_v15 = vpop.permute.xlu1 %928  ;;  %v927_v21 = vpop.permute.xlu0 %926  ;;  %v1135_v39 = vmul.f32 %v3170_v29, %v1132_v45 }
 0x14c   : > { %v937_v44 = vadd.f32 %v929_v15, %v904_v40  ;;  %v936_v46 = vadd.f32 %v927_v21, %v903_v42  ;;  %v1671_v11 = vrot.slane %v1662_v58, 2  ;;  %v1668_v3 = vrot.slane %v1660_v2, 2 }
 0x14d   : > { %1528 = vrot.lane.b32.xlu1 %v1519_v61, %s2622_s19  ;;  %1526 = vrot.lane.b32.xlu0 %v1518_v62, %s2622_s19  ;;  %v1669_v62 = vrot.slane %v1661_v56, 2  ;;  %v1673_v15 = vrot.slane %v1663_v12, 2  ;;  %v1694_v21 = vmul.f32 %v3176_v30, %v1692_v1  ;;  %v983_v40 = vmul.f32 %v3160_v22, %v979_v7 }
 0x14e   : > { %v982_v42 = vmul.f32 %v3170_v29, %v979_v7  ;;  %v1133_v2 = vmul.f32 %v3153_v14, %v1132_v45  ;;  %v1142_v7 = vrot.slane %v1134_v47, 2 }
 0x14f   : > { %v958_v35 = vpop.permute.xlu1 %957  ;;  %v956_v36 = vpop.permute.xlu0 %955  ;;  %v1672_v8 = vsel %vm386_vm1, %v1669_v62, %v1671_v11  ;;  %v1670_v18 = vsel %vm386_vm1, %v1668_v3, %v1669_v62  ;;  %v1674_v17 = vsel %vm386_vm1, %v1671_v11, %v1673_v15  ;;  %v1702_v26 = vrot.slane %v1694_v21, 2 }
 0x150   : > { %v968_v37 = vadd.f32 %v958_v35, %v935_v27  ;;  %v967_v19 = vadd.f32 %v956_v36, %v934_v33  ;;  %v1136_v21 = vmul.f32 %v3160_v22, %v1132_v45 }
 0x151   : > { %1532 = vrot.lane.b32.xlu1 %v1521_v4, %s2622_s19  ;;  %1530 = vrot.lane.b32.xlu0 %v1520_v23, %s2622_s19  ;;  %v1695_v4 = vmul.f32 %v3170_v29, %v1692_v1  ;;  %v1693_v23 = vmul.f32 %v3153_v14, %v1692_v1 }
 0x152   : > { %2369 = vst.msk [vmem:[%s3050_s16 + $0x48] sm:$0xff] %vm468_vm2, %v968_v37  ;;  %2368 = vst.msk [vmem:[%s3050_s16 + $0x40] sm:$0xff] %vm468_vm2, %v967_v19  ;;  %v1043_v37 = vmul.f32 %v3176_v30, %v1041_v28  ;;  %v1044_v19 = vmul.f32 %v3170_v29, %v1041_v28 }
 0x153   : > { %v962_v51 = vpop.permute.xlu1 %961  ;;  %v960_v52 = vpop.permute.xlu0 %959  ;;  %v1704_v27 = vrot.slane %v1695_v4, 2  ;;  %v1701_v33 = vrot.slane %v1693_v23, 2  ;;  %v1768_v4 = vstv %s3417_s10  ;;  %s2432_s10 = sld [smem:[#allocation6 + $0x383]] }
 0x154   : > { %v970_v53 = vadd.f32 %v962_v51, %v937_v44  ;;  %v969_v54 = vadd.f32 %v960_v52, %v936_v46  ;;  %v1706_v46 = vrot.slane %v1696_v34, 2  ;;  %v987_v52 = vadd.f32 %v983_v40, %v977_v10 }
 0x155   : > { %1586 = vrot.lane.b32.xlu1 %v1581_v43, %s2621_s11  ;;  %1584 = vrot.lane.b32.xlu0 %v1579_v20, %s2621_s11  ;;  %v985_v43 = vadd.f32 %v981_v25, %v977_v10  ;;  %v984_v20 = vadd.f32 %v980_v16, %v977_v10  ;;  %v1705_v48 = vsel %vm386_vm1, %v1702_v26, %v1704_v27  ;;  %v1146_v40 = vrot.slane %v1136_v21, 2 }
 0x156   : > { %2371 = vst.msk [vmem:[%s3050_s16 + $0x58] sm:$0x3f] %vm472_vm3, %v970_v53  ;;  %v1703_v44 = vsel %vm386_vm1, %v1701_v33, %v1702_v26  ;;  %v986_v53 = vadd.f32 %v982_v42, %v977_v10  ;;  %v1707_v58 = vsel %vm386_vm1, %v1704_v27, %v1706_v46  ;;  %v1819_v27 = vstv %s3428_s22  ;;  %s2429_s22 = sld [smem:[#allocation6 + $0x380]] }
 0x157   : > { %2370 = vst.msk [vmem:[%s3050_s16 + $0x50] sm:$0xff] %vm468_vm2, %v969_v54  ;;  %v3358_v32 = vpop.permute.xlu1 %1000  ;;  %v3360_v50 = vpop.permute.xlu0 %998  ;;  %v1051_v54 = vrot.slane %v1043_v37, 1  ;;  %v1770_v42 = vmul.f32 %v3176_v30, %v1768_v4  ;;  %v1769_v37 = vmul.f32 %v3153_v14, %v1768_v4 }
 0x158   : > { %v1011_v41 = vadd.f32 %v3358_v32, %v985_v43  ;;  %v1010_v56 = vadd.f32 %v3360_v50, %v984_v20 }
 0x159   : > { %1590 = vrot.lane.b32.xlu1 %v1582_v38, %s2621_s11  ;;  %1588 = vrot.lane.b32.xlu0 %v1583_v55, %s2621_s11  ;;  %v1042_v38 = vmul.f32 %v3153_v14, %v1041_v28  ;;  %v1053_v55 = vrot.slane %v1044_v19, 1 }
 0x15b   : > { %v3369_v6 = vpop.permute.xlu1 %1004  ;;  %v3371_v61 = vpop.permute.xlu0 %1002  ;;  %v1050_v60 = vrot.slane %v1042_v38, 1  ;;  %v1054_v12 = vsel %vm294_vm0, %v1051_v54, %v1053_v55 }
 0x15c   : > { %v1013_v1 = vadd.f32 %v3369_v6, %v987_v52 }
 0x15d   : > { %1619 = vrot.lane.b32.xlu1 %v1614_v57, %s2622_s19  ;;  %1617 = vrot.lane.b32.xlu0 %v1612_v59, %s2622_s19  ;;  %v1742_v57 = vstv %s3398_s9  ;;  %v1052_v32 = vsel %vm294_vm0, %v1050_v60, %v1051_v54  ;;  %v1772_v54 = vmul.f32 %v3160_v22, %v1768_v4  ;;  %s2414_s9 = sld [smem:[#allocation7 + $0x6]] }
 0x15e   : > { %v1744_v50 = vmul.f32 %v3176_v30, %v1742_v57  ;;  %v1743_v3 = vmul.f32 %v3153_v14, %v1742_v57  ;;  %v1746_v6 = vmul.f32 %v3160_v22, %v1742_v57 }
 0x15f   : > { %v3377_v5 = vpop.permute.xlu1 %1026  ;;  %v3379_v0 = vpop.permute.xlu0 %1024 }
 0x160   : > { %v1037_v62 = vadd.f32 %v3377_v5, %v1011_v41  ;;  %v1036_v11 = vadd.f32 %v3379_v0, %v1010_v56  ;;  %v1012_v5 = vadd.f32 %v3371_v61, %v986_v53  ;;  %v1144_v0 = vrot.slane %v1135_v39, 2 }
 0x161   : > { %1623 = vrot.lane.b32.xlu1 %v1615_v63, %s2622_s19  ;;  %1621 = vrot.lane.b32.xlu0 %v1616_v13, %s2622_s19  ;;  %v1055_v13 = vrot.slane %v1045_v31, 1  ;;  %v1745_v61 = vmul.f32 %v3170_v29, %v1742_v57  ;;  %v3472_v57 = vmul.f32 %v3160_v22, %v1819_v27 }
 0x162   : > { %v1062_v10 = vadd.f32 %v1054_v12, %v1037_v62  ;;  %v1061_v16 = vadd.f32 %v1052_v32, %v1036_v11  ;;  %v1147_v52 = vsel %vm386_vm1, %v1144_v0, %v1146_v40 }
 0x163   : > { %v3388_v24 = vpop.permute.xlu1 %1030  ;;  %v3390_v9 = vpop.permute.xlu0 %1028  ;;  %v1056_v28 = vsel %vm294_vm0, %v1053_v55, %v1055_v13 }
 0x164   : > { %v1039_v23 = vadd.f32 %v3388_v24, %v1013_v1  ;;  %v1038_v25 = vadd.f32 %v3390_v9, %v1012_v5  ;;  %v1145_v24 = vsel %vm386_vm1, %v1142_v7, %v1144_v0  ;;  %v1993_v1 = vstv %s3464_s21  ;;  %s3783_s21 = sld [smem:[#allocation7 + $0x7]] }
 0x165   : > { %1677 = vrot.lane.b32.xlu1 %v1672_v8, %s2621_s11  ;;  %1675 = vrot.lane.b32.xlu0 %v1670_v18, %s2621_s11  ;;  %v1141_v18 = vrot.slane %v1133_v2, 2  ;;  %v1833_v5 = vrot.slane %v3472_v57, 1 }
 0x166   : > { %v1064_v19 = vadd.f32 %v1055_v13, %v1039_v23  ;;  %v1063_v43 = vadd.f32 %v1056_v28, %v1038_v25  ;;  %v1996_v25 = vmul.f32 %v3170_v29, %v1993_v1 }
 0x167   : > { %v3400_v35 = vpop.permute.xlu1 %1084  ;;  %v3402_v36 = vpop.permute.xlu0 %1082  ;;  %v1143_v33 = vsel %vm386_vm1, %v1141_v18, %v1142_v7  ;;  %v1994_v18 = vmul.f32 %v3153_v14, %v1993_v1 }
 0x168   : > { %v1094_v26 = vadd.f32 %v3402_v36, %v1061_v16  ;;  %v1822_v36 = vmul.f32 %v3170_v29, %v1819_v27  ;;  %v2019_v16 = vstv %s2431_s26  ;;  %s3789_s26 = sld [smem:[#allocation6 + $0x306]] }
 0x169   : > { %1681 = vrot.lane.b32.xlu1 %v1673_v15, %s2621_s11  ;;  %1679 = vrot.lane.b32.xlu0 %v1674_v17, %s2621_s11  ;;  %v1095_v17 = vadd.f32 %v3400_v35, %v1062_v10  ;;  %v1821_v35 = vmul.f32 %v3176_v30, %v1819_v27  ;;  %v1995_v10 = vmul.f32 %v3176_v30, %v1993_v1 }
 0x16b   : > { %v3413_v49 = vpop.permute.xlu1 %1088  ;;  %v3415_v51 = vpop.permute.xlu0 %1086  ;;  %v1829_v39 = vrot.slane %v1821_v35, 1  ;;  %v1228_v35 = vstv %s2386_s24 }
 0x16d   : > { %1710 = vrot.lane.b32.xlu1 %v1705_v48, %s2622_s19  ;;  %1708 = vrot.lane.b32.xlu0 %v1703_v44, %s2622_s19  ;;  %v1820_v48 = vmul.f32 %v3153_v14, %v1819_v27  ;;  %v1097_v44 = vadd.f32 %v3413_v49, %v1064_v19  ;;  %v1771_v49 = vmul.f32 %v3170_v29, %v1768_v4  ;;  %v2070_v27 = vstv %s2433_s18  ;;  %s3806_s18 = sld [smem:[#allocation6 + $0x386]] }
 0x16f   : > { %v1118_v59 = vpop.permute.xlu1 %1117  ;;  %v1116_v63 = vpop.permute.xlu0 %1115  ;;  %v1828_v41 = vrot.slane %v1820_v48, 1  ;;  %v2023_v48 = vmul.f32 %v3160_v22, %v2019_v16 }
 0x170   : > { %v1128_v20 = vadd.f32 %v1118_v59, %v1095_v17  ;;  %v1127_v38 = vadd.f32 %v1116_v63, %v1094_v26  ;;  %v1997_v17 = vmul.f32 %v3160_v22, %v1993_v1  ;;  %v3565_v1 = vld [vmem:[%s2748_s12 + $0x18] sm:$0xff] }
 0x171   : > { %1714 = vrot.lane.b32.xlu1 %v1706_v46, %s2622_s19  ;;  %1712 = vrot.lane.b32.xlu0 %v1707_v58, %s2622_s19  ;;  %v1096_v46 = vadd.f32 %v3415_v51, %v1063_v43  ;;  %v1831_v51 = vrot.slane %v1822_v36, 1  ;;  %v1830_v13 = vsel %vm294_vm0, %v1828_v41, %v1829_v39 }
 0x172   : > { %v1153_v31 = vadd.f32 %v1145_v24, %v1128_v20  ;;  %v1152_v47 = vadd.f32 %v1143_v33, %v1127_v38  ;;  %v2022_v33 = vmul.f32 %v3170_v29, %v2019_v16  ;;  %v1292_v38 = vstv %s2390_s15 }
 0x173   : > { %v1122_v8 = vpop.permute.xlu1 %1121  ;;  %v1120_v15 = vpop.permute.xlu0 %1119  ;;  %v1832_v32 = vsel %vm294_vm0, %v1829_v39, %v1831_v51  ;;  %v1834_v21 = vsel %vm294_vm0, %v1831_v51, %v1833_v5  ;;  %v1293_v51 = vmul.f32 %v3153_v14, %v1292_v38 }
 0x174   : > { %v1130_v55 = vadd.f32 %v1122_v8, %v1097_v44  ;;  %v1129_v60 = vadd.f32 %v1120_v15, %v1096_v46  ;;  %v2074_v44 = vmul.f32 %v3160_v22, %v2070_v27 }
 0x175   : > { %1753 = vrot.lane.b32.xlu1 %v1744_v50, %s2621_s11  ;;  %1751 = vrot.lane.b32.xlu0 %v1743_v3, %s2621_s11 }
 0x176   : > { %v1155_v2 = vadd.f32 %v1146_v40, %v1130_v55  ;;  %v1154_v62 = vadd.f32 %v1147_v52, %v1129_v60  ;;  %v2072_v40 = vmul.f32 %v3176_v30, %v2070_v27  ;;  %v1294_v60 = vmul.f32 %v3176_v30, %v1292_v38 }
 0x177   : > { %v1176_v9 = vpop.permute.xlu1 %1175  ;;  %v1174_v34 = vpop.permute.xlu0 %1173 }
 0x178   : > { %v1186_v56 = vadd.f32 %v1176_v9, %v1153_v31  ;;  %v1185_v58 = vadd.f32 %v1174_v34, %v1152_v47  ;;  %v1230_v9 = vstv %s2387_s23  ;;  %v2021_v34 = vmul.f32 %v3176_v30, %v2019_v16 }
 0x179   : > { %1757 = vrot.lane.b32.xlu1 %v1746_v6, %s2621_s11  ;;  %1755 = vrot.lane.b32.xlu0 %v1745_v61, %s2621_s11  ;;  %v2020_v61 = vmul.f32 %v3153_v14, %v2019_v16  ;;  %v1232_v20 = vmul.f32 %v3176_v30, %v1230_v9  ;;  %v1231_v36 = vmul.f32 %v3153_v14, %v1230_v9  ;;  %v2080_v46 = vrot.slane %v2072_v40, 1 }
 0x17a   : > { %v1233_v55 = vmul.f32 %v3170_v29, %v1230_v9  ;;  %v3539_v31 = vmul.f32 %v3170_v29, %v1292_v38 }
 0x17b   : > { %v1180_v45 = vpop.permute.xlu1 %1179  ;;  %v1178_v53 = vpop.permute.xlu0 %1177  ;;  %v1236_v39 = vadd.f32 %v1232_v20, %v1228_v35  ;;  %v1235_v41 = vadd.f32 %v1231_v36, %v1228_v35 }
 0x17c   : > { %v1188_v50 = vadd.f32 %v1180_v45, %v1155_v2  ;;  %v1187_v3 = vadd.f32 %v1178_v53, %v1154_v62  ;;  %v1852_v53 = vstv %s2420_s25 }
 0x17d   : > { %1779 = vrot.lane.b32.xlu1 %v1770_v42, %s2622_s19  ;;  %1777 = vrot.lane.b32.xlu0 %v1769_v37, %s2622_s19  ;;  %v2073_v42 = vmul.f32 %v3170_v29, %v2070_v27  ;;  %v2071_v37 = vmul.f32 %v3153_v14, %v2070_v27  ;;  %v1855_v2 = vmul.f32 %v3170_v29, %v1852_v53  ;;  %v3556_v14 = vld [vmem:[%s2748_s12] sm:$0xff] }
 0x17e   : > { %v1853_v62 = vmul.f32 %v3556_v14, %v1852_v53 }
 0x17f   : > { %v1209_v59 = vpop.permute.xlu1 %1208  ;;  %v1207_v63 = vpop.permute.xlu0 %1206  ;;  %v2082_v45 = vrot.slane %v2073_v42, 1  ;;  %v2079_v52 = vrot.slane %v2071_v37, 1 }
 0x180   : > { %v1219_v11 = vadd.f32 %v1209_v59, %v1186_v56  ;;  %v1218_v12 = vadd.f32 %v1207_v63, %v1185_v58  ;;  %v1854_v56 = vmul.f32 %v3176_v30, %v1852_v53  ;;  %v1383_v58 = vstv %s3518_s27 }
 0x181   : > { %1783 = vrot.lane.b32.xlu1 %v1772_v54, %s2622_s19  ;;  %1781 = vrot.lane.b32.xlu0 %v1771_v49, %s2622_s19  ;;  %v1234_v54 = vmul.f32 %v3160_v22, %v1230_v9  ;;  %v2084_v22 = vrot.slane %v2074_v44, 1  ;;  %v2083_v59 = vsel %vm294_vm0, %v2080_v46, %v2082_v45  ;;  %v2081_v63 = vsel %vm294_vm0, %v2079_v52, %v2080_v46 }
 0x182   : > { %2383 = vst.msk [vmem:[%s3050_s16 + $0x68] sm:$0xff] %vm468_vm2, %v1219_v11  ;;  %2382 = vst.msk [vmem:[%s3050_s16 + $0x60] sm:$0xff] %vm468_vm2, %v1218_v12  ;;  %v1237_v11 = vadd.f32 %v1233_v55, %v1228_v35  ;;  %v1302_v12 = vrot.slane %v1294_v60, 1  ;;  %v1385_v29 = vmul.f32 %v3176_v30, %v1383_v58  ;;  %v1861_v16 = vrot.slane %v1853_v62, 1 }
 0x183   : > { %v1213_v7 = vpop.permute.xlu1 %1212  ;;  %v1211_v0 = vpop.permute.xlu0 %1210  ;;  %v1238_v57 = vadd.f32 %v1234_v54, %v1228_v35  ;;  %v1384_v9 = vmul.f32 %v3556_v14, %v1383_v58 }
 0x184   : > { %v1221_v8 = vadd.f32 %v1213_v7, %v1188_v50  ;;  %v1220_v15 = vadd.f32 %v1211_v0, %v1187_v3  ;;  %v1301_v3 = vrot.slane %v1293_v51, 1  ;;  %v2103_v7 = vstv %s3528_s29 }
 0x185   : > { %1837 = vrot.lane.b32.xlu1 %v1832_v32, %s2621_s11  ;;  %1835 = vrot.lane.b32.xlu0 %v1830_v13, %s2621_s11  ;;  %v1304_v32 = vrot.slane %v3539_v31, 1  ;;  %v2085_v0 = vsel %vm294_vm0, %v2082_v45, %v2084_v22  ;;  %v1393_v20 = vrot.slane %v1385_v29, 2  ;;  %v2104_v36 = vmul.f32 %v3556_v14, %v2103_v7 }
 0x186   : > { %2385 = vst.msk [vmem:[%s3050_s16 + $0x78] sm:$0x3f] %vm472_vm3, %v1221_v8  ;;  %v1862_v8 = vrot.slane %v1854_v56, 1  ;;  %v1303_v42 = vsel %vm294_vm0, %v1301_v3, %v1302_v12  ;;  %v1392_v52 = vrot.slane %v1384_v9, 2 }
 0x187   : > { %2384 = vst.msk [vmem:[%s3050_s16 + $0x70] sm:$0xff] %vm468_vm2, %v1220_v15  ;;  %v3494_v4 = vpop.permute.xlu1 %1251  ;;  %v3496_v23 = vpop.permute.xlu0 %1249  ;;  %v3576_v15 = vld [vmem:[%s2748_s12 + $0x10] sm:$0xff] }
 0x188   : > { %v1261_v30 = vadd.f32 %v3496_v23, %v1235_v41  ;;  %v3593_v40 = vmul.f32 %v3576_v15, %v2103_v7  ;;  %v1863_v44 = vsel %vm294_vm0, %v1861_v16, %v1862_v8  ;;  %v2112_v41 = vrot.slane %v2104_v36, 1 }
 0x189   : > { %2002 = vrot.lane.b32.xlu1 %v1994_v18, %s2621_s11  ;;  %1839 = vrot.lane.b32.xlu0 %v1834_v21, %s2621_s11  ;;  %v3579_v18 = vmul.f32 %v3576_v15, %v1383_v58  ;;  %v1856_v21 = vmul.f32 %v3565_v1, %v1852_v53  ;;  %v1387_v53 = vmul.f32 %v3565_v1, %v1383_v58 }
 0x18a   : > { %v2115_v55 = vrot.slane %v3593_v40, 1  ;;  %v2107_v58 = vmul.f32 %v3565_v1, %v2103_v7 }
 0x18b   : > { %v3502_v28 = vpop.permute.xlu1 %1255  ;;  %v3504_v6 = vpop.permute.xlu0 %1253  ;;  %v1866_v35 = vrot.slane %v1856_v21, 1  ;;  %v1397_v62 = vrot.slane %v1387_v53, 2 }
 0x18d   : > { %2006 = vrot.lane.b32.xlu1 %v1996_v25, %s2621_s11  ;;  %2004 = vrot.lane.b32.xlu0 %v1995_v10, %s2621_s11  ;;  %v1262_v25 = vadd.f32 %v3494_v4, %v1236_v39  ;;  %v1864_v10 = vrot.slane %v1855_v2, 1 }
 0x18f   : > { %v3510_v26 = vpop.permute.xlu1 %1277  ;;  %v3512_v24 = vpop.permute.xlu0 %1275  ;;  %v1867_v51 = vsel %vm294_vm0, %v1864_v10, %v1866_v35 }
 0x190   : > { %v1288_v4 = vadd.f32 %v3510_v26, %v1262_v25  ;;  %v1287_v23 = vadd.f32 %v3512_v24, %v1261_v30  ;;  %v1263_v26 = vadd.f32 %v3504_v6, %v1237_v11  ;;  %v1865_v24 = vsel %vm294_vm0, %v1862_v8, %v1864_v10 }
 0x191   : > { %2028 = vrot.lane.b32.xlu1 %v2020_v61, %s2622_s19  ;;  %2008 = vrot.lane.b32.xlu0 %v1997_v17, %s2621_s11  ;;  %v1305_v61 = vsel %vm294_vm0, %v1302_v12, %v1304_v32  ;;  %v2117_v8 = vrot.slane %v2107_v58, 1 }
 0x192   : > { %v1312_v39 = vadd.f32 %v1303_v42, %v1287_v23 }
 0x193   : > { %v3523_v19 = vpop.permute.xlu1 %1281  ;;  %v3525_v43 = vpop.permute.xlu0 %1279  ;;  %v2118_v40 = vsel %vm294_vm0, %v2115_v55, %v2117_v8 }
 0x194   : > { %v1289_v31 = vadd.f32 %v3525_v43, %v1263_v26 }
 0x195   : > { %2032 = vrot.lane.b32.xlu1 %v2022_v33, %s2622_s19  ;;  %2030 = vrot.lane.b32.xlu0 %v2021_v34, %s2622_s19  ;;  %v3589_v33 = vld [vmem:[%s2748_s12 + $0x8] sm:$0xff]  ;;  %s3619_s12 = sld [smem:[#allocation6 + $0x387]] }
 0x196   : > { %v2105_v34 = vmul.f32 %v3589_v33, %v2103_v7 }
 0x197   : > { %v3541_v47 = vpop.permute.xlu1 %1335  ;;  %v3543_v49 = vpop.permute.xlu0 %1333 }
 0x198   : > { %v2113_v54 = vrot.slane %v2105_v34, 1  ;;  %v1345_v56 = vadd.f32 %v3543_v49, %v1312_v39 }
 0x199   : > { %1841 = vrot.lane.b32.xlu1 %v1833_v5, %s2621_s11  ;;  %2034 = vrot.lane.b32.xlu0 %v2023_v48, %s2622_s19  ;;  %v3568_v5 = vmul.f32 %v3565_v1, %v1292_v38  ;;  %v1395_v38 = vrot.slane %v3579_v18, 2  ;;  %v1264_v48 = vadd.f32 %v3502_v28, %v1238_v57  ;;  %v1313_v28 = vadd.f32 %v1305_v61, %v1288_v4 }
 0x19a   : > { %v2116_v57 = vsel %vm294_vm0, %v2113_v54, %v2115_v55 }
 0x19b   : > { %v3560_v13 = vpop.permute.xlu1 %1339  ;;  %v3562_v50 = vpop.permute.xlu0 %1337  ;;  %v1306_v37 = vrot.slane %v3568_v5, 1  ;;  %v1290_v60 = vadd.f32 %v3523_v19, %v1264_v48  ;;  %v1910_v19 = vstv %s3584_s28  ;;  %v1396_v43 = vsel %vm386_vm1, %v1393_v20, %v1395_v38 }
 0x19c   : > { %v1912_v49 = vmul.f32 %v3589_v33, %v1910_v19  ;;  %v1913_v3 = vmul.f32 %v3576_v15, %v1910_v19  ;;  %v1911_v5 = vmul.f32 %v3556_v14, %v1910_v19  ;;  %v1398_v21 = vsel %vm386_vm1, %v1395_v38, %v1397_v62 }
 0x19d   : > { %2088 = vrot.lane.b32.xlu1 %v2083_v59, %s2621_s11  ;;  %2086 = vrot.lane.b32.xlu0 %v2081_v63, %s2621_s11  ;;  %v1307_v6 = vsel %vm294_vm0, %v1304_v32, %v1306_v37  ;;  %v1394_v63 = vsel %vm386_vm1, %v1392_v52, %v1393_v20  ;;  %v1315_v11 = vadd.f32 %v1306_v37, %v1290_v60  ;;  %v2161_v4 = vstv %s3619_s12 }
 0x19e   : > { %v1314_v12 = vadd.f32 %v1307_v6, %v1289_v31  ;;  %v2162_v52 = vmul.f32 %v3556_v14, %v2161_v4 }
 0x19f   : > { %v1369_v17 = vpop.permute.xlu1 %1368  ;;  %v1367_v27 = vpop.permute.xlu0 %1366  ;;  %v1348_v29 = vadd.f32 %v3560_v13, %v1315_v11  ;;  %v1922_v13 = vrot.slane %v1913_v3, 2 }
 0x1a0   : > { %v1347_v7 = vadd.f32 %v3562_v50, %v1314_v12  ;;  %v1914_v50 = vmul.f32 %v3565_v1, %v1910_v19  ;;  %v2170_v6 = vrot.slane %v2162_v52, 2 }
 0x1a1   : > { %2092 = vrot.lane.b32.xlu1 %v2084_v22, %s2621_s11  ;;  %2090 = vrot.lane.b32.xlu0 %v2085_v0, %s2621_s11  ;;  %v1346_v22 = vadd.f32 %v3541_v47, %v1313_v28  ;;  %v1378_v47 = vadd.f32 %v1367_v27, %v1345_v56  ;;  %v2114_v0 = vsel %vm294_vm0, %v2112_v41, %v2113_v54  ;;  %v1919_v27 = vrot.slane %v1911_v5, 2 }
 0x1a2   : > { %v1924_v26 = vrot.slane %v1914_v50, 2  ;;  %v1943_v41 = vstv %s3638_s30 }
 0x1a3   : > { %v1373_v46 = vpop.permute.xlu1 %1372  ;;  %v1371_v45 = vpop.permute.xlu0 %1370  ;;  %v1379_v32 = vadd.f32 %v1369_v17, %v1346_v22  ;;  %v1403_v61 = vadd.f32 %v1394_v63, %v1378_v47  ;;  %v1920_v17 = vrot.slane %v1912_v49, 2  ;;  %v1945_v58 = vmul.f32 %v3589_v33, %v1943_v41 }
 0x1a4   : > { %v1381_v30 = vadd.f32 %v1373_v46, %v1348_v29  ;;  %v1380_v10 = vadd.f32 %v1371_v45, %v1347_v7  ;;  %v2164_v45 = vmul.f32 %v3576_v15, %v2161_v4  ;;  %v1925_v31 = vsel %vm386_vm1, %v1922_v13, %v1924_v26 }
 0x1a5   : > { %1870 = vrot.lane.b32.xlu1 %v1865_v24, %s2622_s19  ;;  %1868 = vrot.lane.b32.xlu0 %v1863_v44, %s2622_s19  ;;  %v1404_v16 = vadd.f32 %v1396_v43, %v1379_v32  ;;  %v1923_v36 = vsel %vm386_vm1, %v1920_v17, %v1922_v13  ;;  %v1921_v48 = vsel %vm386_vm1, %v1919_v27, %v1920_v17  ;;  %v1953_v11 = vrot.slane %v1945_v58, 2 }
 0x1a6   : > { %v1406_v37 = vadd.f32 %v1397_v62, %v1381_v30  ;;  %v1405_v20 = vadd.f32 %v1398_v21, %v1380_v10  ;;  %v2163_v24 = vmul.f32 %v3589_v33, %v2161_v4  ;;  %v2173_v39 = vrot.slane %v2164_v45, 2 }
 0x1a7   : > { %v1427_v59 = vpop.permute.xlu1 %1426  ;;  %v1425_v2 = vpop.permute.xlu0 %1424  ;;  %v1946_v19 = vmul.f32 %v3576_v15, %v1943_v41  ;;  %v1947_v32 = vmul.f32 %v3565_v1, %v1943_v41  ;;  %v2194_v29 = vstv %s2437_s4  ;;  %v1481_v7 = vstv %s2401_s5 }
 0x1a8   : > { %v1437_v9 = vadd.f32 %v1427_v59, %v1404_v16  ;;  %v1436_v34 = vadd.f32 %v1425_v2, %v1403_v61  ;;  %v2171_v28 = vrot.slane %v2163_v24, 2  ;;  %v1944_v2 = vmul.f32 %v3556_v14, %v1943_v41 }
 0x1a9   : > { %1874 = vrot.lane.b32.xlu1 %v1866_v35, %s2622_s19  ;;  %1872 = vrot.lane.b32.xlu0 %v1867_v51, %s2622_s19  ;;  %v2165_v51 = vmul.f32 %v3565_v1, %v2161_v4  ;;  %v1955_v12 = vrot.slane %v1946_v19, 2  ;;  %v2196_v21 = vmul.f32 %v3589_v33, %v2194_v29  ;;  %v2195_v30 = vmul.f32 %v3556_v14, %v2194_v29 }
 0x1aa   : > { %v2174_v43 = vsel %vm386_vm1, %v2171_v28, %v2173_v39  ;;  %v2172_v59 = vsel %vm386_vm1, %v2170_v6, %v2171_v28  ;;  %v1952_v49 = vrot.slane %v1944_v2, 2  ;;  %v1483_v61 = vmul.f32 %v3589_v33, %v1481_v7 }
 0x1ab   : > { %v1431_v18 = vpop.permute.xlu1 %1430  ;;  %v1429_v25 = vpop.permute.xlu0 %1428  ;;  %v2175_v63 = vrot.slane %v2165_v51, 2  ;;  %v1479_v17 = vstv %s2400_s6  ;;  %v1482_v13 = vmul.f32 %v3556_v14, %v1481_v7  ;;  %v1543_v27 = vstv %s2404_s7 }
 0x1ac   : > { %v1439_v44 = vadd.f32 %v1431_v18, %v1406_v37  ;;  %v1438_v46 = vadd.f32 %v1429_v25, %v1405_v20  ;;  %v1954_v18 = vsel %vm386_vm1, %v1952_v49, %v1953_v11  ;;  %v2197_v25 = vmul.f32 %v3576_v15, %v2194_v29 }
 0x1ad   : > { %2121 = vrot.lane.b32.xlu1 %v2116_v57, %s2622_s19  ;;  %2119 = vrot.lane.b32.xlu0 %v2114_v0, %s2622_s19  ;;  %v2176_v47 = vsel %vm386_vm1, %v2173_v39, %v2175_v63  ;;  %v1956_v0 = vsel %vm386_vm1, %v1953_v11, %v1955_v12  ;;  %v2198_v4 = vmul.f32 %v3565_v1, %v2194_v29 }
 0x1ae   : > { %v1545_v37 = vmul.f32 %v3589_v33, %v1543_v27  ;;  %v1546_v20 = vmul.f32 %v3576_v15, %v1543_v27  ;;  %v1547_v45 = vmul.f32 %v3565_v1, %v1543_v27 }
 0x1af   : > { %v1460_v23 = vpop.permute.xlu1 %1459  ;;  %v1458_v42 = vpop.permute.xlu0 %1457 }
 0x1b0   : > { %v1470_v38 = vadd.f32 %v1460_v23, %v1437_v9  ;;  %v1469_v35 = vadd.f32 %v1458_v42, %v1436_v34  ;;  %v2204_v9 = vrot.slane %v2196_v21, 2  ;;  %v2206_v34 = vrot.slane %v2197_v25, 2 }
 0x1b1   : > { %2125 = vrot.lane.b32.xlu1 %v2117_v8, %s2622_s19  ;;  %2123 = vrot.lane.b32.xlu0 %v2118_v40, %s2622_s19  ;;  %v1957_v8 = vrot.slane %v1947_v32, 2  ;;  %v2203_v40 = vrot.slane %v2195_v30, 2  ;;  %v1557_v58 = vrot.slane %v1547_v45, 1 }
 0x1b2   : > { %2397 = vst.msk [vmem:[%s3050_s16 + $0x88] sm:$0xff] %vm468_vm2, %v1470_v38  ;;  %2396 = vst.msk [vmem:[%s3050_s16 + $0x80] sm:$0xff] %vm468_vm2, %v1469_v35  ;;  %v1544_v38 = vmul.f32 %v3556_v14, %v1543_v27  ;;  %v1487_v35 = vadd.f32 %v1483_v61, %v1479_v17  ;;  %v2207_v24 = vsel %vm386_vm1, %v2204_v9, %v2206_v34 }
 0x1b3   : > { %v1464_v53 = vpop.permute.xlu1 %1463  ;;  %v1462_v54 = vpop.permute.xlu0 %1461  ;;  %v1958_v50 = vsel %vm386_vm1, %v1955_v12, %v1957_v8 }
 0x1b4   : > { %v1472_v55 = vadd.f32 %v1464_v53, %v1439_v44  ;;  %v1471_v60 = vadd.f32 %v1462_v54, %v1438_v46  ;;  %v2205_v44 = vsel %vm386_vm1, %v2203_v40, %v2204_v9  ;;  %v2208_v46 = vrot.slane %v2198_v4, 2 }
 0x1b5   : > { %1928 = vrot.lane.b32.xlu1 %v1923_v36, %s2621_s11  ;;  %1926 = vrot.lane.b32.xlu0 %v1921_v48, %s2621_s11  ;;  %v1485_v36 = vmul.f32 %v3565_v1, %v1481_v7  ;;  %v1484_v48 = vmul.f32 %v3576_v15, %v1481_v7  ;;  %v1553_v54 = vrot.slane %v1545_v37, 1 }
 0x1b6   : > { %2399 = vst.msk [vmem:[%s3050_s16 + $0x98] sm:$0x3f] %vm472_vm3, %v1472_v55  ;;  %v1555_v55 = vrot.slane %v1546_v20, 1  ;;  %v2209_v51 = vsel %vm386_vm1, %v2206_v34, %v2208_v46 }
 0x1b7   : > { %2398 = vst.msk [vmem:[%s3050_s16 + $0x90] sm:$0xff] %vm468_vm2, %v1471_v60  ;;  %v3660_v22 = vpop.permute.xlu1 %1502  ;;  %v3662_v56 = vpop.permute.xlu0 %1500  ;;  %v1552_v60 = vrot.slane %v1544_v38, 1  ;;  %v1488_v28 = vadd.f32 %v1484_v48, %v1479_v17 }
 0x1b8   : > { %v1513_v39 = vadd.f32 %v3660_v22, %v1487_v35  ;;  %v1556_v2 = vsel %vm294_vm0, %v1553_v54, %v1555_v55  ;;  %v1558_v49 = vsel %vm294_vm0, %v1555_v55, %v1557_v58 }
 0x1b9   : > { %1932 = vrot.lane.b32.xlu1 %v1924_v26, %s2621_s11  ;;  %1930 = vrot.lane.b32.xlu0 %v1925_v31, %s2621_s11  ;;  %v1486_v26 = vadd.f32 %v1482_v13, %v1479_v17  ;;  %v1489_v31 = vadd.f32 %v1485_v36, %v1479_v17  ;;  %v1554_v11 = vsel %vm294_vm0, %v1552_v60, %v1553_v54 }
 0x1bb   : > { %v3671_v62 = vpop.permute.xlu1 %1506  ;;  %v3673_v57 = vpop.permute.xlu0 %1504  ;;  %v1512_v6 = vadd.f32 %v3662_v56, %v1486_v26 }
 0x1bc   : > { %v1515_v32 = vadd.f32 %v3671_v62, %v1489_v31 }
 0x1bd   : > { %2179 = vrot.lane.b32.xlu1 %v2174_v43, %s2621_s11  ;;  %2177 = vrot.lane.b32.xlu0 %v2172_v59, %s2621_s11 }
 0x1bf   : > { %v1529_v3 = vpop.permute.xlu1 %1528  ;;  %v1527_v5 = vpop.permute.xlu0 %1526 }
 0x1c0   : > { %v1539_v59 = vadd.f32 %v1529_v3, %v1513_v39 }
 0x1c1   : > { %2183 = vrot.lane.b32.xlu1 %v2175_v63, %s2621_s11  ;;  %2181 = vrot.lane.b32.xlu0 %v2176_v47, %s2621_s11  ;;  %s2407_s11 = sld [smem:[#allocation6 + $0x286]]  ;;  %v1538_v63 = vadd.f32 %v1527_v5, %v1512_v6  ;;  %v1514_v47 = vadd.f32 %v3673_v57, %v1488_v28 }
 0x1c3   : > { %v1533_v10 = vpop.permute.xlu1 %1532  ;;  %v1531_v16 = vpop.permute.xlu0 %1530 }
 0x1c4   : > { %v1541_v29 = vadd.f32 %v1533_v10, %v1515_v32  ;;  %v1540_v7 = vadd.f32 %v1531_v16, %v1514_v47 }
 0x1c5   : > { %1961 = vrot.lane.b32.xlu1 %v1956_v0, %s2622_s19  ;;  %1959 = vrot.lane.b32.xlu0 %v1954_v18, %s2622_s19  ;;  %v1564_v0 = vadd.f32 %v1556_v2, %v1539_v59 }
 0x1c6   : > { %v1566_v62 = vadd.f32 %v1557_v58, %v1541_v29 }
 0x1c7   : > { %v1587_v23 = vpop.permute.xlu1 %1586  ;;  %v1585_v42 = vpop.permute.xlu0 %1584  ;;  %v1634_v41 = vstv %s2407_s11 }
 0x1c8   : > { %v1636_v22 = vmul.f32 %v3589_v33, %v1634_v41  ;;  %v1637_v56 = vmul.f32 %v3576_v15, %v1634_v41  ;;  %v1635_v12 = vmul.f32 %v3556_v14, %v1634_v41  ;;  %v1638_v30 = vmul.f32 %v3565_v1, %v1634_v41 }
 0x1c9   : > { %1965 = vrot.lane.b32.xlu1 %v1957_v8, %s2622_s19  ;;  %1963 = vrot.lane.b32.xlu0 %v1958_v50, %s2622_s19  ;;  %v1563_v8 = vadd.f32 %v1554_v11, %v1538_v63  ;;  %v1597_v61 = vadd.f32 %v1587_v23, %v1564_v0  ;;  %v1565_v50 = vadd.f32 %v1558_v49, %v1540_v7 }
 0x1ca   : > { %v1644_v18 = vrot.slane %v1636_v22, 2  ;;  %v1646_v21 = vrot.slane %v1637_v56, 2  ;;  %v1643_v25 = vrot.slane %v1635_v12, 2  ;;  %v1648_v16 = vrot.slane %v1638_v30, 2 }
 0x1cb   : > { %v1591_v52 = vpop.permute.xlu1 %1590  ;;  %v1589_v53 = vpop.permute.xlu0 %1588  ;;  %v1596_v17 = vadd.f32 %v1585_v42, %v1563_v8 }
 0x1cc   : > { %v1647_v34 = vsel %vm386_vm1, %v1644_v18, %v1646_v21  ;;  %v1645_v10 = vsel %vm386_vm1, %v1643_v25, %v1644_v18  ;;  %v1599_v40 = vadd.f32 %v1591_v52, %v1566_v62  ;;  %v1598_v4 = vadd.f32 %v1589_v53, %v1565_v50 }
 0x1cd   : > { %2212 = vrot.lane.b32.xlu1 %v2207_v24, %s2622_s19  ;;  %2210 = vrot.lane.b32.xlu0 %v2205_v44, %s2622_s19  ;;  %v1649_v36 = vsel %vm386_vm1, %v1646_v21, %v1648_v16 }
 0x1cf   : > { %v1620_v19 = vpop.permute.xlu1 %1619  ;;  %v1618_v43 = vpop.permute.xlu0 %1617 }
 0x1d0   : > { %v1630_v57 = vadd.f32 %v1620_v19, %v1597_v61  ;;  %v1629_v9 = vadd.f32 %v1618_v43, %v1596_v17  ;;  %v1732_v17 = vstv %s2415_s8 }
 0x1d1   : > { %2216 = vrot.lane.b32.xlu1 %v2208_v46, %s2622_s19  ;;  %2214 = vrot.lane.b32.xlu0 %v2209_v51, %s2622_s19  ;;  %s2418_s19 = sld [smem:[#allocation6 + $0x303]] }
 0x1d2   : > { %v1655_v42 = vadd.f32 %v1647_v34, %v1630_v57  ;;  %v1654_v35 = vadd.f32 %v1645_v10, %v1629_v9  ;;  %v1734_v57 = vmul.f32 %v3589_v33, %v1732_v17  ;;  %v1733_v9 = vmul.f32 %v3556_v14, %v1732_v17 }
 0x1d3   : > { %v1624_v3 = vpop.permute.xlu1 %1623  ;;  %v1622_v5 = vpop.permute.xlu0 %1621  ;;  %v1730_v34 = vstv %s2414_s9  ;;  %v1736_v10 = vmul.f32 %v3565_v1, %v1732_v17 }
 0x1d4   : > { %v1632_v38 = vadd.f32 %v1624_v3, %v1599_v40  ;;  %v1631_v23 = vadd.f32 %v1622_v5, %v1598_v4  ;;  %v2045_v40 = vstv %s2432_s10  ;;  %v1735_v4 = vmul.f32 %v3576_v15, %v1732_v17 }
 0x1d5   : > { %v1885_v17 = vstv %s3789_s26 }
 0x1d6   : > { %v1657_v46 = vadd.f32 %v1648_v16, %v1632_v38  ;;  %v1656_v45 = vadd.f32 %v1649_v36, %v1631_v23  ;;  %v1983_v36 = vstv %s2429_s22 }
 0x1d7   : > { %v1678_v13 = vpop.permute.xlu1 %1677  ;;  %v1676_v27 = vpop.permute.xlu0 %1675  ;;  %v1794_v61 = vstv %s2418_s19 }
 0x1d8   : > { %v1688_v48 = vadd.f32 %v1678_v13, %v1655_v42  ;;  %v1687_v26 = vadd.f32 %v1676_v27, %v1654_v35  ;;  %v1796_v13 = vmul.f32 %v3589_v33, %v1794_v61  ;;  %v1797_v27 = vmul.f32 %v3576_v15, %v1794_v61 }
 0x1d9   : > { %v1795_v16 = vmul.f32 %v3556_v14, %v1794_v61  ;;  %v3797_v38 = vmul.f32 %v3565_v1, %v1794_v61  ;;  %v1738_v35 = vadd.f32 %v1734_v57, %v1730_v34  ;;  %v1986_v61 = vmul.f32 %v3576_v15, %v1983_v36 }
 0x1db   : > { %v1682_v37 = vpop.permute.xlu1 %1681  ;;  %v1680_v20 = vpop.permute.xlu0 %1679 }
 0x1dc   : > { %v1690_v54 = vadd.f32 %v1682_v37, %v1657_v46  ;;  %v1689_v55 = vadd.f32 %v1680_v20, %v1656_v45  ;;  %v1804_v37 = vrot.slane %v1796_v13, 1  ;;  %v1806_v20 = vrot.slane %v1797_v27, 1 }
 0x1dd   : > { %v1803_v46 = vrot.slane %v1795_v16, 1  ;;  %v2048_v45 = vmul.f32 %v3576_v15, %v2045_v40  ;;  %v1985_v13 = vmul.f32 %v3589_v33, %v1983_v36  ;;  %v1987_v27 = vmul.f32 %v3565_v1, %v1983_v36 }
 0x1df   : > { %v1711_v24 = vpop.permute.xlu1 %1710  ;;  %v1709_v44 = vpop.permute.xlu0 %1708  ;;  %v1805_v16 = vsel %vm294_vm0, %v1803_v46, %v1804_v37 }
 0x1e0   : > { %v1721_v52 = vadd.f32 %v1711_v24, %v1688_v48  ;;  %v1720_v53 = vadd.f32 %v1709_v44, %v1687_v26  ;;  %v2047_v48 = vmul.f32 %v3589_v33, %v2045_v40  ;;  %v2046_v26 = vmul.f32 %v3556_v14, %v2045_v40 }
 0x1e1   : > { %v1737_v24 = vadd.f32 %v1733_v9, %v1730_v34  ;;  %v1740_v44 = vadd.f32 %v1736_v10, %v1730_v34 }
 0x1e2   : > { %2411 = vst.msk [vmem:[%s3050_s16 + $0xa8] sm:$0xff] %vm468_vm2, %v1721_v52  ;;  %2410 = vst.msk [vmem:[%s3050_s16 + $0xa0] sm:$0xff] %vm468_vm2, %v1720_v53  ;;  %v1739_v52 = vadd.f32 %v1735_v4, %v1730_v34  ;;  %v1807_v53 = vsel %vm294_vm0, %v1804_v37, %v1806_v20  ;;  %v2055_v57 = vrot.slane %v2047_v48, 1  ;;  %v2054_v9 = vrot.slane %v2046_v26, 1 }
 0x1e3   : > { %v1715_v60 = vpop.permute.xlu1 %1714  ;;  %v1713_v31 = vpop.permute.xlu0 %1712 }
 0x1e4   : > { %v1723_v28 = vadd.f32 %v1715_v60, %v1690_v54  ;;  %v1722_v39 = vadd.f32 %v1713_v31, %v1689_v55  ;;  %v1808_v54 = vrot.slane %v3797_v38, 1  ;;  %v3811_v55 = vmul.f32 %v3565_v1, %v2045_v40 }
 0x1e5   : > { %v2057_v40 = vrot.slane %v2048_v45, 1  ;;  %v1887_v38 = vmul.f32 %v3589_v33, %v1885_v17  ;;  %v2056_v45 = vsel %vm294_vm0, %v2054_v9, %v2055_v57 }
 0x1e6   : > { %2413 = vst.msk [vmem:[%s3050_s16 + $0xb8] sm:$0x3f] %vm472_vm3, %v1723_v28  ;;  %v1981_v28 = vstv %s3783_s21 }
 0x1e7   : > { %2412 = vst.msk [vmem:[%s3050_s16 + $0xb0] sm:$0xff] %vm468_vm2, %v1722_v39  ;;  %v3729_v6 = vpop.permute.xlu1 %1753  ;;  %v3731_v51 = vpop.permute.xlu0 %1751  ;;  %v1984_v39 = vmul.f32 %v3556_v14, %v1983_v36  ;;  %v1886_v36 = vmul.f32 %v3556_v14, %v1885_v17  ;;  %v1990_v26 = vadd.f32 %v1986_v61, %v1981_v28  ;;  %v1991_v46 = vadd.f32 %v1987_v27, %v1981_v28 }
 0x1e8   : > { %v1764_v34 = vadd.f32 %v3729_v6, %v1738_v35  ;;  %v1763_v10 = vadd.f32 %v3731_v51, %v1737_v24  ;;  %v1809_v35 = vsel %vm294_vm0, %v1806_v20, %v1808_v54  ;;  %v1989_v24 = vadd.f32 %v1985_v13, %v1981_v28 }
 0x1e9   : > { %v1988_v37 = vadd.f32 %v1984_v39, %v1981_v28  ;;  %v1894_v20 = vrot.slane %v1886_v36, 2 }
 0x1eb   : > { %v3733_v41 = vpop.permute.xlu1 %1757  ;;  %v3735_v58 = vpop.permute.xlu0 %1755 }
 0x1ec   : > { %v1766_v4 = vadd.f32 %v3733_v41, %v1740_v44 }
 0x1ef   : > { %v3737_v19 = vpop.permute.xlu1 %1779  ;;  %v3739_v43 = vpop.permute.xlu0 %1777 }
 0x1f0   : > { %v1790_v6 = vadd.f32 %v3737_v19, %v1764_v34  ;;  %v1789_v51 = vadd.f32 %v3739_v43, %v1763_v10  ;;  %v1895_v43 = vrot.slane %v1887_v38, 2 }
 0x1f2   : > { %v1814_v44 = vadd.f32 %v1805_v16, %v1789_v51 }
 0x1f3   : > { %v3741_v59 = vpop.permute.xlu1 %1783  ;;  %v3743_v63 = vpop.permute.xlu0 %1781 }
 0x1f4   : > { %v1792_v13 = vadd.f32 %v3741_v59, %v1766_v4 }
 0x1f6   : > { %v1817_v10 = vadd.f32 %v1808_v54, %v1792_v13 }
 0x1f7   : > { %v3745_v2 = vpop.permute.xlu1 %1837  ;;  %v3747_v11 = vpop.permute.xlu0 %1835 }
 0x1f8   : > { %v1847_v9 = vadd.f32 %v3747_v11, %v1814_v44 }
 0x1fb   : > { %v3749_v22 = vpop.permute.xlu1 %2002  ;;  %v3751_v56 = vpop.permute.xlu0 %1839 }
 0x1ff   : > { %v3753_v12 = vpop.permute.xlu1 %2006  ;;  %v3755_v32 = vpop.permute.xlu0 %2004 }
 0x200   : > { %v2015_v27 = vadd.f32 %v3755_v32, %v1989_v24  ;;  %v1896_v32 = vsel %vm386_vm1, %v1894_v20, %v1895_v43 }
 0x203   : > { %v3757_v47 = vpop.permute.xlu1 %2028  ;;  %v3759_v49 = vpop.permute.xlu0 %2008 }
 0x207   : > { %v3761_v3 = vpop.permute.xlu1 %2032  ;;  %v3763_v5 = vpop.permute.xlu0 %2030 }
 0x20b   : > { %v3765_v29 = vpop.permute.xlu1 %1841  ;;  %v3767_v7 = vpop.permute.xlu0 %2034 }
 0x20f   : > { %v3769_v0 = vpop.permute.xlu1 %2088  ;;  %v3771_v8 = vpop.permute.xlu0 %2086 }
 0x213   : > { %v3773_v18 = vpop.permute.xlu1 %2092  ;;  %v3775_v21 = vpop.permute.xlu0 %2090 }
 0x214   : > { %3944 = vst [vmem:[#allocation11_spill] sm:$0xff] %v3773_v18  ;;  %3945 = vst [vmem:[#allocation12_spill] sm:$0xff] %v3775_v21  ;;  %v1765_v21 = vadd.f32 %v3735_v58, %v1739_v52  ;;  %v2058_v18 = vsel %vm294_vm0, %v2055_v57, %v2057_v40  ;;  %v1815_v58 = vadd.f32 %v1807_v53, %v1790_v6 }
 0x215   : > { %v2014_v52 = vadd.f32 %v3749_v22, %v1988_v37 }
 0x216   : > { %v1791_v41 = vadd.f32 %v3743_v63, %v1765_v21  ;;  %v2041_v21 = vadd.f32 %v3763_v5, %v2015_v27 }
 0x217   : > { %v3777_v25 = vpop.permute.xlu1 %1870  ;;  %v3779_v30 = vpop.permute.xlu0 %1868  ;;  %v2040_v63 = vadd.f32 %v3757_v47, %v2014_v52 }
 0x218   : > { %v1880_v11 = vadd.f32 %v3779_v30, %v1847_v9 }
 0x219   : > { %v2065_v6 = vadd.f32 %v2056_v45, %v2040_v63 }
 0x21b   : > { %v3785_v62 = vpop.permute.xlu1 %1874  ;;  %v3787_v50 = vpop.permute.xlu0 %1872  ;;  %v3955_v52 = vld [vmem:[#allocation12_spill] sm:$0xff] }
 0x21f   : > { %v3799_v23 = vpop.permute.xlu1 %2121  ;;  %v3801_v42 = vpop.permute.xlu0 %2119 }
 0x220   : > { %3946 = vst [vmem:[#allocation13_spill] sm:$0xff] %v3799_v23  ;;  %3947 = vst [vmem:[#allocation14_spill] sm:$0xff] %v3801_v42  ;;  %v2136_v42 = vstv %s3806_s18  ;;  %v3950_v23 = vrot.slane %v3811_v55, 1 }
 0x221   : > { %v2138_v57 = vmul.f32 %v3589_v33, %v2136_v42  ;;  %v3861_v34 = vmul.f32 %v3576_v15, %v2136_v42  ;;  %v2137_v59 = vmul.f32 %v3556_v14, %v2136_v42  ;;  %v1816_v33 = vadd.f32 %v1809_v35, %v1791_v41 }
 0x222   : > { %v2060_v19 = vsel %vm294_vm0, %v2057_v40, %v3950_v23  ;;  %v1889_v23 = vmul.f32 %v3565_v1, %v1885_v17  ;;  %v2017_v14 = vadd.f32 %v3759_v49, %v1991_v46  ;;  %v1850_v40 = vadd.f32 %v3765_v29, %v1817_v10 }
 0x223   : > { %v3813_v60 = vpop.permute.xlu1 %2125  ;;  %v3815_v31 = vpop.permute.xlu0 %2123  ;;  %v2146_v47 = vrot.slane %v2138_v57, 2  ;;  %v1849_v5 = vadd.f32 %v3751_v56, %v1816_v33  ;;  %v2148_v4 = vrot.slane %v3861_v34, 2  ;;  %v2145_v38 = vrot.slane %v2137_v59, 2 }
 0x224   : > { %3948 = vst [vmem:[#allocation15_spill] sm:$0xff] %v3813_v60  ;;  %3949 = vst [vmem:[#allocation16_spill] sm:$0xff] %v3815_v31  ;;  %v3829_v31 = vmul.f32 %v3576_v15, %v1885_v17  ;;  %v2016_v15 = vadd.f32 %v3753_v12, %v1990_v26  ;;  %v1899_v16 = vrot.slane %v1889_v23, 2  ;;  %v2043_v54 = vadd.f32 %v3767_v7, %v2017_v14 }
 0x225   : > { %v1883_v12 = vadd.f32 %v3785_v62, %v1850_v40  ;;  %v1882_v49 = vadd.f32 %v3787_v50, %v1849_v5  ;;  %v1905_v35 = vadd.f32 %v1896_v32, %v1880_v11  ;;  %v2098_v29 = vadd.f32 %v3771_v8, %v2065_v6 }
 0x226   : > { %v1897_v39 = vrot.slane %v3829_v31, 2  ;;  %v1848_v31 = vadd.f32 %v3745_v2, %v1815_v58  ;;  %v2042_v36 = vadd.f32 %v3761_v3, %v2016_v15  ;;  %v2140_v3 = vmul.f32 %v3565_v1, %v2136_v42  ;;  %v3954_v58 = vld [vmem:[#allocation11_spill] sm:$0xff] }
 0x227   : > { %v3831_v60 = vpop.permute.xlu1 %1928  ;;  %v3834_v48 = vpop.permute.xlu0 %1926  ;;  %v2149_v24 = vsel %vm386_vm1, %v2146_v47, %v2148_v4  ;;  %v2147_v62 = vsel %vm386_vm1, %v2145_v38, %v2146_v47  ;;  %v3951_v50 = vrot.slane %v3811_v55, 1  ;;  %v3952_v45 = vld [vmem:[#allocation13_spill] sm:$0xff]  ;;  %v1908_v42 = vadd.f32 %v1899_v16, %v1883_v12 }
 0x228   : > { %v1898_v22 = vsel %vm386_vm1, %v1895_v43, %v1897_v39  ;;  %v1881_v2 = vadd.f32 %v3777_v25, %v1848_v31  ;;  %v2066_v25 = vadd.f32 %v2058_v18, %v2041_v21  ;;  %v1900_v26 = vsel %vm386_vm1, %v1897_v39, %v1899_v16  ;;  %v3953_v43 = vld [vmem:[#allocation14_spill] sm:$0xff] }
 0x229   : > { %v1938_v18 = vadd.f32 %v3834_v48, %v1905_v35  ;;  %v2068_v46 = vadd.f32 %v3951_v50, %v2043_v54  ;;  %v2131_v39 = vadd.f32 %v3953_v43, %v2098_v29  ;;  %v2150_v41 = vrot.slane %v2140_v3, 2 }
 0x22a   : > { %v1906_v37 = vadd.f32 %v1898_v22, %v1881_v2  ;;  %v2099_v56 = vadd.f32 %v3769_v0, %v2066_v25  ;;  %v2067_v0 = vadd.f32 %v2060_v19, %v2042_v36 }
 0x22b   : > { %v3848_v61 = vpop.permute.xlu1 %1932  ;;  %v3850_v28 = vpop.permute.xlu0 %1930  ;;  %v2101_v44 = vadd.f32 %v3954_v58, %v2068_v46  ;;  %v2156_v57 = vadd.f32 %v2147_v62, %v2131_v39  ;;  %v3956_v34 = vld [vmem:[#allocation15_spill] sm:$0xff]  ;;  %v3957_v63 = vld [vmem:[#allocation16_spill] sm:$0xff] }
 0x22c   : > { %v1939_v7 = vadd.f32 %v3831_v60, %v1906_v37  ;;  %v2132_v8 = vadd.f32 %v3952_v45, %v2099_v56  ;;  %v1907_v60 = vadd.f32 %v1900_v26, %v1882_v49  ;;  %v2100_v27 = vadd.f32 %v3955_v52, %v2067_v0 }
 0x22d   : > { %v1941_v55 = vadd.f32 %v3848_v61, %v1908_v42  ;;  %v2134_v59 = vadd.f32 %v3956_v34, %v2101_v44  ;;  %v2151_v61 = vsel %vm386_vm1, %v2148_v4, %v2150_v41 }
 0x22e   : > { %v1940_v19 = vadd.f32 %v3850_v28, %v1907_v60  ;;  %v2157_v23 = vadd.f32 %v2149_v24, %v2132_v8  ;;  %v2133_v21 = vadd.f32 %v3957_v63, %v2100_v27 }
 0x22f   : > { %v2180_v53 = vpop.permute.xlu1 %2179  ;;  %v2178_v17 = vpop.permute.xlu0 %2177  ;;  %v2159_v11 = vadd.f32 %v2150_v41, %v2134_v59 }
 0x230   : > { %v2190_v33 = vadd.f32 %v2180_v53, %v2157_v23  ;;  %v2189_v28 = vadd.f32 %v2178_v17, %v2156_v57  ;;  %v2158_v15 = vadd.f32 %v2151_v61, %v2133_v21 }
 0x233   : > { %v2184_v30 = vpop.permute.xlu1 %2183  ;;  %v2182_v51 = vpop.permute.xlu0 %2181 }
 0x234   : > { %v2192_v47 = vadd.f32 %v2184_v30, %v2159_v11  ;;  %v2191_v5 = vadd.f32 %v2182_v51, %v2158_v15 }
 0x237   : > { %v1962_v20 = vpop.permute.xlu1 %1961  ;;  %v1960_v1 = vpop.permute.xlu0 %1959 }
 0x238   : > { %v1972_v13 = vadd.f32 %v1962_v20, %v1939_v7  ;;  %v1971_v48 = vadd.f32 %v1960_v1, %v1938_v18 }
 0x23a   : > { %2425 = vst.msk [vmem:[%s3050_s16 + $0xc8] sm:$0xff] %vm468_vm2, %v1972_v13  ;;  %2424 = vst.msk [vmem:[%s3050_s16 + $0xc0] sm:$0xff] %vm468_vm2, %v1971_v48 }
 0x23b   : > { %v1966_v31 = vpop.permute.xlu1 %1965  ;;  %v1964_v9 = vpop.permute.xlu0 %1963 }
 0x23c   : > { %v1974_v22 = vadd.f32 %v1966_v31, %v1941_v55  ;;  %v1973_v32 = vadd.f32 %v1964_v9, %v1940_v19 }
 0x23e   : > { %2427 = vst.msk [vmem:[%s3050_s16 + $0xd8] sm:$0x3f] %vm472_vm3, %v1974_v22 }
 0x23f   : > { %2426 = vst.msk [vmem:[%s3050_s16 + $0xd0] sm:$0xff] %vm468_vm2, %v1973_v32  ;;  %v2213_v10 = vpop.permute.xlu1 %2212  ;;  %v2211_v2 = vpop.permute.xlu0 %2210 }
 0x240   : > { %v2223_v14 = vadd.f32 %v2213_v10, %v2190_v33  ;;  %v2222_v16 = vadd.f32 %v2211_v2, %v2189_v28 }
 0x242   : > { %2439 = vst.msk [vmem:[%s3050_s16 + $0xe8] sm:$0xff] %vm468_vm2, %v2223_v14  ;;  %2438 = vst.msk [vmem:[%s3050_s16 + $0xe0] sm:$0xff] %vm468_vm2, %v2222_v16 }
 0x243   : > { %v2217_v53 = vpop.permute.xlu1 %2216  ;;  %v2215_v17 = vpop.permute.xlu0 %2214 }
 0x244   : > { %v2225_v40 = vadd.f32 %v2217_v53, %v2192_v47  ;;  %v2224_v4 = vadd.f32 %v2215_v17, %v2191_v5 }
 0x246   : > { %2441 = vst.msk [vmem:[%s3050_s16 + $0xf8] sm:$0x3f] %vm472_vm3, %v2225_v40 }
 0x247   : > { %2440 = vst.msk [vmem:[%s3050_s16 + $0xf0] sm:$0xff] %vm468_vm2, %v2224_v4 }
 0x248 PF: > { %p15_p3 = scmp.ge.s32.totalorder %s2665_s17, 4   ;;  %s3958_s12 = smov %s2606_s13 }
 0x249   : > { %s3959_s13 = smov %s2610_s14  ;;  %s3960_s14 = smov %s2675_s20 }
 0x24a   : > { %s3961_s15 = smov %s2665_s17  ;;  %17 = sbr.rel (!%p15_p3) target bundleno = 5 (0x5), region = 89 }
 0x24f   :  { %2252 = vsyncpa [#allocation3], 1 }
 0x250   :  { %2254 = vsyncpa [#allocation3 + $0x1], 1 }
 0x251   :  { %2255 = vsyncpa [#allocation4], 1 }
 0x252   :  { %2257 = vsyncpa [#allocation4 + $0x1], 1 }
 0x253   :  { %2258 = vsyncpa [#allocation5], 1 }
 0x254   :  { %2260 = vsyncpa [#allocation5 + $0x1], 1 }

</bundles_post_ra>
